<compile_context>
chip_gen: v5e
topology: v5e:2x2
jax: 0.10.0
libtpu: 0.0.40
codegen_flags: <defaults>
</compile_context>

<pallas_src>
import numpy as np
import jax
import jax.numpy as jnp
from jax.experimental import pallas as pl
from jax.experimental.pallas import tpu as pltpu


# ----------------------------------------------------------------------------- utils

def _round_up(x, m):
    return ((x + m - 1) // m) * m


# ----------------------------------------------------------------------------- kernel

def _tree_lstm_kernel(node_idx_ref, child_idx_ref, root_idx_ref,          # SMEM (scalar prefetch)
                      x_ref, s_ref, g_ref, w4_ref, b4_ref, u3_ref, uf_ref,  # VMEM inputs
                      fh_ref, fc_ref,                                      # VMEM outputs
                      h_res, c_res, ch_buf, cc_buf, hn_buf, cn_buf):       # VMEM scratch
    it = pl.program_id(1)
    n_it = pl.num_programs(1)
    K = hn_buf.shape[0]        # padded wavefront node count (multiple of 8)
    E = ch_buf.shape[0]        # padded edge count per wavefront (multiple of 8)
    O = h_res.shape[1]         # lane-padded hidden width (multiple of 128)
    T = fh_ref.shape[0]        # padded number of trees

    # -- new layer: reset the resident recurrent state ---------------------------------
    @pl.when(it == 0)
    def _init():
        h_res[...] = jnp.zeros_like(h_res)
        c_res[...] = jnp.zeros_like(c_res)

    # -- gather this wavefront's child rows from the resident state --------------------
    # (padded edge slots point at the dummy row; their contribution is zeroed by S/G)
    for e in range(E):
        idx = child_idx_ref[it * E + e]
        ch_buf[pl.ds(e, 1), :] = h_res[pl.ds(idx, 1), :]
        cc_buf[pl.ds(e, 1), :] = c_res[pl.ds(idx, 1), :]

    x = x_ref[...]                                  # (K, IN)
    s = s_ref[...]                                  # (K, E) parent <- edge one-hot
    g = g_ref[...]                                  # (E, K) edge   <- parent one-hot
    child_h = ch_buf[...]
    child_c = cc_buf[...]

    # one matmul for all four gates; each gate owns a 128-lane column block
    xw = jnp.dot(x, w4_ref[...], preferred_element_type=jnp.float32) + b4_ref[...]   # (K, 4*O)

    # segment-sum of child hidden states per parent; zero S at the leaf wavefront
    # reproduces the leaf branch (iou = W_iou x + b, c_sum = 0) automatically.
    h_sum = jnp.dot(s, child_h, preferred_element_type=jnp.float32)                  # (K, O)
    iou = xw[:, :3 * O] + jnp.dot(h_sum, u3_ref[...], preferred_element_type=jnp.float32)
    i_g = jax.nn.sigmoid(iou[:, :O])
    o_g = jax.nn.sigmoid(iou[:, O:2 * O])
    u_g = jnp.tanh(iou[:, 2 * O:])

    # forget gate per edge: expand the parent's (W_f x + b_f) row to its edges via G,
    # add U_f child_h — this replaces the xf = features[parent] gather entirely.
    f_pre = (jnp.dot(g, xw[:, 3 * O:], preferred_element_type=jnp.float32)
             + jnp.dot(child_h, uf_ref[...], preferred_element_type=jnp.float32))    # (E, O)
    fc = jax.nn.sigmoid(f_pre) * child_c
    c_sum = jnp.dot(s, fc, preferred_element_type=jnp.float32)                       # (K, O)

    c_new = i_g * u_g + c_sum
    h_new = o_g * jnp.tanh(c_new)
    hn_buf[...] = h_new
    cn_buf[...] = c_new

    # -- scatter updated rows back into the resident state -----------------------------
    # (padded wavefront slots scatter to the dummy row -> harmless)
    for j in range(K):
        row = node_idx_ref[it * K + j]
        h_res[pl.ds(row, 1), :] = hn_buf[pl.ds(j, 1), :]
        c_res[pl.ds(row, 1), :] = cn_buf[pl.ds(j, 1), :]

    # -- layer finished: emit this layer's root rows ------------------------------------
    @pl.when(it == n_it - 1)
    def _emit():
        for t in range(T):
            r = root_idx_ref[t]
            fh_ref[pl.ds(t, 1), :] = h_res[pl.ds(r, 1), :]
            fc_ref[pl.ds(t, 1), :] = c_res[pl.ds(r, 1), :]


# ----------------------------------------------------------------------------- host plan

def _build_plan(node_order, adjacency_list, edge_order, treesizes):
    """Layer-invariant scheduling tables, built once per forest (numpy)."""
    node_order = np.asarray(node_order)
    adjacency_list = np.asarray(adjacency_list).reshape(-1, 2)
    edge_order = np.asarray(edge_order)
    N = int(node_order.shape[0])
    n_trees = len(treesizes)
    max_iter = int(node_order.max()) + 1

    wave_nodes = [np.nonzero(node_order == it)[0] for it in range(max_iter)]
    wave_edges = [np.nonzero(edge_order == it)[0] if it > 0 else np.zeros((0,), np.int64)
                  for it in range(max_iter)]

    K = _round_up(max(len(w) for w in wave_nodes), 8)
    E = _round_up(max([1] + [len(e) for e in wave_edges]), 8)
    N_pad = _round_up(N + 1, 8)          # at least one dummy row
    DUMMY = N
    T_pad = _round_up(max(n_trees, 1), 8)

    node_idx_tab = np.full((max_iter, K), DUMMY, np.int32)
    child_idx_tab = np.full((max_iter, E), DUMMY, np.int32)
    s_tab = np.zeros((max_iter, K, E), np.float32)   # parent <- edge
    g_tab = np.zeros((max_iter, E, K), np.float32)   # edge   <- parent (= S^T)

    for it in range(max_iter):
        nodes = wave_nodes[it]
        node_idx_tab[it, :len(nodes)] = nodes.astype(np.int32)
        if it == 0:
            continue
        adj = adjacency_list[wave_edges[it]]
        parent_idx = adj[:, 0].astype(np.int64)
        child_idx = adj[:, 1].astype(np.int64)
        ne = parent_idx.shape[0]
        # unique_consecutive grouping of parents (torch semantics)
        grp = np.concatenate([[0], np.cumsum(parent_idx[1:] != parent_idx[:-1])]).astype(np.int64)
        uniq_parents = parent_idx[np.concatenate([[True], parent_idx[1:] != parent_idx[:-1]])]
        # The original module silently assumes unique-consecutive parent order == node-mask
        # order; the fused kernel relies on it too, so make the contract explicit.
        assert np.array_equal(uniq_parents, nodes), (
            "adjacency_list ordering does not match node_order wavefront ordering")
        child_idx_tab[it, :ne] = child_idx.astype(np.int32)
        s_tab[it, grp, np.arange(ne)] = 1.0
        g_tab[it, np.arange(ne), grp] = 1.0

    # findStartTree — reproduces the original exactly, including the use of the
    # slice-local argmax index as a global index for trees t > 0 (upstream quirk).
    count = 0
    roots = []
    for t in range(n_trees):
        if t == 0:
            idx = int(np.argmax(node_order[:treesizes[t]]))
        else:
            idx = int(np.argmax(node_order[count:count + int(treesizes[t])]))
        count += int(treesizes[t])
        roots.append(idx)
    root_idx_tab = np.full((T_pad,), DUMMY, np.int32)
    root_idx_tab[:n_trees] = np.asarray(roots, np.int32)

    return dict(N=N, N_pad=N_pad, max_iter=max_iter, K=K, E=E, T_pad=T_pad,
                node_idx_tab=node_idx_tab, child_idx_tab=child_idx_tab,
                root_idx_tab=root_idx_tab, s_tab=s_tab, g_tab=g_tab)


# ----------------------------------------------------------------------------- device fwd

def _device_forward_impl(params, features_pad, node_idx_tab, child_idx_tab, root_idx_tab,
                         s_tab, g_tab):
    n_layer = len(params)
    N_pad, IN = features_pad.shape
    max_iter, K = node_idx_tab.shape
    E = child_idx_tab.shape[1]
    T_pad = root_idx_tab.shape[0]
    O = params[0]['w_f'].shape[0]
    OP = _round_up(O, 128)                       # lane-padded gate width

    # wavefront features (padded/dummy slots gather the zero dummy row)
    x_wave = features_pad[node_idx_tab]          # (max_iter, K, IN)

    # pack weights: one (IN, 4*OP) slab per layer, gates i|o|u|f each in a 128-lane block
    w4 = jnp.zeros((n_layer, IN, 4 * OP), jnp.float32)
    b4 = jnp.zeros((n_layer, 1, 4 * OP), jnp.float32)
    u3 = jnp.zeros((n_layer, OP, 3 * OP), jnp.float32)
    uf = jnp.zeros((n_layer, OP, OP), jnp.float32)
    for l, p in enumerate(params):
        for gi in range(3):
            w4 = w4.at[l, :, gi * OP:gi * OP + O].set(p['w_iou'][gi * O:(gi + 1) * O, :].T)
            b4 = b4.at[l, 0, gi * OP:gi * OP + O].set(p['b_iou'][gi * O:(gi + 1) * O])
            u3 = u3.at[l, :O, gi * OP:gi * OP + O].set(p['u_iou'][gi * O:(gi + 1) * O, :].T)
        w4 = w4.at[l, :, 3 * OP:3 * OP + O].set(p['w_f'].T)
        b4 = b4.at[l, 0, 3 * OP:3 * OP + O].set(p['b_f'])
        uf = uf.at[l, :O, :O].set(p['u_f'].T)

    grid_spec = pltpu.PrefetchScalarGridSpec(
        num_scalar_prefetch=3,
        grid=(n_layer, max_iter),
        in_specs=[
            pl.BlockSpec((None, K, IN), lambda l, it, *_: (it, 0, 0)),        # x per wavefront
            pl.BlockSpec((None, K, E), lambda l, it, *_: (it, 0, 0)),         # S
            pl.BlockSpec((None, E, K), lambda l, it, *_: (it, 0, 0)),         # G = S^T
            pl.BlockSpec((None, IN, 4 * OP), lambda l, it, *_: (l, 0, 0)),    # W4 (layer-resident)
            pl.BlockSpec((None, 1, 4 * OP), lambda l, it, *_: (l, 0, 0)),     # b4
            pl.BlockSpec((None, OP, 3 * OP), lambda l, it, *_: (l, 0, 0)),    # U_iou
            pl.BlockSpec((None, OP, OP), lambda l, it, *_: (l, 0, 0)),        # U_f
        ],
        out_specs=[
            pl.BlockSpec((None, T_pad, OP), lambda l, it, *_: (l, 0, 0)),
            pl.BlockSpec((None, T_pad, OP), lambda l, it, *_: (l, 0, 0)),
        ],
        scratch_shapes=[
            pltpu.VMEM((N_pad, OP), jnp.float32),   # resident h (current layer)
            pltpu.VMEM((N_pad, OP), jnp.float32),   # resident c (current layer)
            pltpu.VMEM((E, OP), jnp.float32),       # gathered child_h
            pltpu.VMEM((E, OP), jnp.float32),       # gathered child_c
            pltpu.VMEM((K, OP), jnp.float32),       # new h rows
            pltpu.VMEM((K, OP), jnp.float32),       # new c rows
        ],
    )

    f_h, f_c = pl.pallas_call(
        _tree_lstm_kernel,
        grid_spec=grid_spec,
        out_shape=[jax.ShapeDtypeStruct((n_layer, T_pad, OP), jnp.float32),
                   jax.ShapeDtypeStruct((n_layer, T_pad, OP), jnp.float32)],
        compiler_params=pltpu.CompilerParams(
            dimension_semantics=("parallel", "arbitrary")),
    )(node_idx_tab.reshape(-1), child_idx_tab.reshape(-1), root_idx_tab,
      x_wave, s_tab, g_tab, w4, b4, u3, uf)
    return f_h, f_c


_device_forward = jax.jit(_device_forward_impl)


# ----------------------------------------------------------------------------- model

def init_params(key, in_features, out_features, n_layer):
    """Deterministic param init matching torch.nn.Linear default U(-1/sqrt(fan_in), +)."""
    params = []
    for _ in range(n_layer):
        key, k0, k1, k2, k3, k4, k5 = jax.random.split(key, 7)
        b1 = 1.0 / np.sqrt(in_features)
        b2 = 1.0 / np.sqrt(out_features)
        params.append(dict(
            w_iou=jax.random.uniform(k0, (3 * out_features, in_features), jnp.float32, -b1, b1),
            b_iou=jax.random.uniform(k1, (3 * out_features,), jnp.float32, -b1, b1),
            u_iou=jax.random.uniform(k2, (3 * out_features, out_features), jnp.float32, -b2, b2),
            w_f=jax.random.uniform(k3, (out_features, in_features), jnp.float32, -b1, b1),
            b_f=jax.random.uniform(k4, (out_features,), jnp.float32, -b1, b1),
            u_f=jax.random.uniform(k5, (out_features, out_features), jnp.float32, -b2, b2),
        ))
    return params


def tree_lstm_forward(params, features, node_order, adjacency_list, edge_order, treesizes,
                      out_features, n_layer):
    del n_layer  # implied by params
    plan = _build_plan(node_order, adjacency_list, edge_order, [int(t) for t in treesizes])
    N, N_pad = plan['N'], plan['N_pad']
    IN = features.shape[1]
    features_pad = jnp.zeros((N_pad, IN), jnp.float32).at[:N, :].set(features)
    f_h, f_c = _device_forward(
        params, features_pad,
        jnp.asarray(plan['node_idx_tab'], jnp.int32),
        jnp.asarray(plan['child_idx_tab'], jnp.int32),
        jnp.asarray(plan['root_idx_tab'], jnp.int32),
        jnp.asarray(plan['s_tab'], jnp.float32),
        jnp.asarray(plan['g_tab'], jnp.float32),
    )
    n_trees = len(treesizes)
    return f_h[:, :n_trees, :out_features], f_c[:, :n_trees, :out_features]


# ----------------------------------------------------------------------------- numpy reference

def _sigmoid(x):
    return 1.0 / (1.0 + np.exp(-x))


def ref_forward(params, features, node_order, adjacency_list, edge_order, treesizes,
                out_features, n_layer):
    features = np.asarray(features, np.float64)
    node_order = np.asarray(node_order)
    adjacency_list = np.asarray(adjacency_list)
    edge_order = np.asarray(edge_order)
    N = node_order.shape[0]
    n_trees = len(treesizes)
    h = np.zeros((n_layer, N, out_features))
    c = np.zeros((n_layer, N, out_features))
    f_h = np.zeros((n_layer, n_trees, out_features))
    f_c = np.zeros((n_layer, n_trees, out_features))
    O = out_features
    for layer in range(n_layer):
        p = {k: np.asarray(v, np.float64) for k, v in params[layer].items()}
        for it in range(int(node_order.max()) + 1):
            nm = node_order == it
            x = features[nm]
            if it == 0:
                iou = x @ p['w_iou'].T + p['b_iou']
            else:
                em = edge_order == it
                adj = adjacency_list[em]
                pi = adj[:, 0].astype(np.int64)
                ci = adj[:, 1].astype(np.int64)
                child_h = h[layer, ci]
                child_c = c[layer, ci]
                grp = np.concatenate([[0], np.cumsum(pi[1:] != pi[:-1])]).astype(np.int64)
                ng = int(grp[-1]) + 1
                h_sum = np.zeros((ng, O))
                np.add.at(h_sum, grp, child_h)
                iou = x @ p['w_iou'].T + p['b_iou'] + h_sum @ p['u_iou'].T
            ig = _sigmoid(iou[:, :O])
            og = _sigmoid(iou[:, O:2 * O])
            ug = np.tanh(iou[:, 2 * O:])
            if it == 0:
                c[layer, nm] = ig * ug
            else:
                f = _sigmoid(features[pi] @ p['w_f'].T + p['b_f'] + child_h @ p['u_f'].T)
                fc = f * child_c
                c_sum = np.zeros((ng, O))
                np.add.at(c_sum, grp, fc)
                c[layer, nm] = ig * ug + c_sum
            h[layer, nm] = og * np.tanh(c[layer, nm])
        count = 0
        roots = []
        for t in range(n_trees):
            if t == 0:
                idx = int(np.argmax(node_order[:treesizes[t]]))
            else:
                idx = int(np.argmax(node_order[count:count + int(treesizes[t])]))
            count += int(treesizes[t])
            roots.append(idx)
        f_h[layer] = h[layer, roots]
        f_c[layer] = c[layer, roots]
    return f_h, f_c


# ----------------------------------------------------------------------------- main

if __name__ == "__main__":
    in_features, out_features, n_layer = 16, 32, 2

    key = jax.random.PRNGKey(0)
    kf, kp = jax.random.split(key)

    # Small forest: tree0 = 5 nodes (0 root; children 1,2; node 1 has children 3,4),
    #               tree1 = 3 nodes (5 root; children 6,7).
    node_order = np.array([2, 1, 0, 0, 0, 1, 0, 0], np.int32)
    adjacency_list = np.array([[0, 1], [0, 2], [1, 3], [1, 4], [5, 6], [5, 7]], np.int32)
    edge_order = np.array([2, 2, 1, 1, 1, 1], np.int32)
    treesizes = [5, 3]

    N = node_order.shape[0]
    features = jax.random.normal(kf, (N, in_features), jnp.float32)
    params = init_params(kp, in_features, out_features, n_layer)

    f_h, f_c = tree_lstm_forward(params, features, node_order, adjacency_list,
                                 edge_order, treesizes, out_features, n_layer)
    f_h = jax.block_until_ready(f_h)
    f_c = jax.block_until_ready(f_c)

    rh, rc = ref_forward(params, features, node_order, adjacency_list, edge_order,
                         treesizes, out_features, n_layer)
    assert f_h.shape == (n_layer, len(treesizes), out_features)
    assert f_c.shape == (n_layer, len(treesizes), out_features)
    assert np.allclose(np.asarray(f_h), rh, atol=2e-3, rtol=2e-3)
    assert np.allclose(np.asarray(f_c), rc, atol=2e-3, rtol=2e-3)

    print("KERNEL_OK")
</pallas_src>

<mosaic_0001>
module attributes {stable_mosaic.version = 11 : i64} {
  func.func @_tree_lstm_kernel(%arg0: i32, %arg1: i32, %arg2: memref<24xi32, #tpu.memory_space<smem>>, %arg3: memref<24xi32, #tpu.memory_space<smem>>, %arg4: memref<8xi32, #tpu.memory_space<smem>>, %arg5: memref<1x8x16xf32, #tpu.memory_space<vmem>>, %arg6: memref<1x8x8xf32, #tpu.memory_space<vmem>>, %arg7: memref<1x8x8xf32, #tpu.memory_space<vmem>>, %arg8: memref<1x16x512xf32, #tpu.memory_space<vmem>>, %arg9: memref<1x1x512xf32, #tpu.memory_space<vmem>>, %arg10: memref<1x128x384xf32, #tpu.memory_space<vmem>>, %arg11: memref<1x128x128xf32, #tpu.memory_space<vmem>>, %arg12: memref<1x8x128xf32, #tpu.memory_space<vmem>>, %arg13: memref<1x8x128xf32, #tpu.memory_space<vmem>>, %arg14: memref<16x128xf32, #tpu.memory_space<vmem>>, %arg15: memref<16x128xf32, #tpu.memory_space<vmem>>, %arg16: memref<8x128xf32, #tpu.memory_space<vmem>>, %arg17: memref<8x128xf32, #tpu.memory_space<vmem>>, %arg18: memref<8x128xf32, #tpu.memory_space<vmem>>, %arg19: memref<8x128xf32, #tpu.memory_space<vmem>>) attributes {dimension_semantics = [#tpu.dimension_semantics<parallel>, #tpu.dimension_semantics<arbitrary>], iteration_bounds = array<i64: 2, 3>, scalar_prefetch = 3 : i64, scratch_operands = 6 : i64, tpu.core_type = #tpu.core_type<tc>, window_params = [{transform_indices = @transform_0, window_bounds = array<i64: 1, 8, 16>}, {transform_indices = @transform_1, window_bounds = array<i64: 1, 8, 8>}, {transform_indices = @transform_2, window_bounds = array<i64: 1, 8, 8>}, {transform_indices = @transform_3, window_bounds = array<i64: 1, 16, 512>}, {transform_indices = @transform_4, window_bounds = array<i64: 1, 1, 512>}, {transform_indices = @transform_5, window_bounds = array<i64: 1, 128, 384>}, {transform_indices = @transform_6, window_bounds = array<i64: 1, 128, 128>}, {transform_indices = @transform_7, window_bounds = array<i64: 1, 8, 128>}, {transform_indices = @transform_8, window_bounds = array<i64: 1, 8, 128>}]} {
    %c0_i32 = arith.constant 0 : i32
    %0 = arith.cmpi eq, %arg1, %c0_i32 : i32
    %1 = arith.extui %0 : i1 to i32
    %c0_i32_0 = arith.constant 0 : i32
    %2 = arith.cmpi ne, %1, %c0_i32_0 : i32
    scf.if %2 {
      %cst_152 = arith.constant 0.000000e+00 : f32
      %220 = vector.broadcast %cst_152 : f32 to vector<16x128xf32>
      %c0_153 = arith.constant 0 : index
      %c0_154 = arith.constant 0 : index
      %221 = vector.load %arg14[%c0_153, %c0_154] : memref<16x128xf32, #tpu.memory_space<vmem>>, vector<16x128xf32>
      tpu.vector_store %arg14[%c0_153, %c0_154], %220 {strides = array<i32>} : memref<16x128xf32, #tpu.memory_space<vmem>>, vector<16x128xf32>,
      %cst_155 = arith.constant 0.000000e+00 : f32
      %222 = vector.broadcast %cst_155 : f32 to vector<16x128xf32>
      %c0_156 = arith.constant 0 : index
      %c0_157 = arith.constant 0 : index
      %223 = vector.load %arg15[%c0_156, %c0_157] : memref<16x128xf32, #tpu.memory_space<vmem>>, vector<16x128xf32>
      tpu.vector_store %arg15[%c0_156, %c0_157], %222 {strides = array<i32>} : memref<16x128xf32, #tpu.memory_space<vmem>>, vector<16x128xf32>,
    } else {
    }
    %c8_i32 = arith.constant 8 : i32
    %3 = arith.muli %arg1, %c8_i32 : i32
    %c0_i32_1 = arith.constant 0 : i32
    %4 = arith.addi %3, %c0_i32_1 : i32
    %5 = arith.index_cast %4 : i32 to index
    %6 = memref.load %arg3[%5] : memref<24xi32, #tpu.memory_space<smem>>
    %7 = arith.index_cast %6 : i32 to index
    %c0 = arith.constant 0 : index
    %8 = vector.load %arg14[%7, %c0] : memref<16x128xf32, #tpu.memory_space<vmem>>, vector<1x128xf32>
    %c0_2 = arith.constant 0 : index
    %c0_3 = arith.constant 0 : index
    %9 = vector.load %arg16[%c0_2, %c0_3] : memref<8x128xf32, #tpu.memory_space<vmem>>, vector<1x128xf32>
    tpu.vector_store %arg16[%c0_2, %c0_3], %8 {strides = array<i32>} : memref<8x128xf32, #tpu.memory_space<vmem>>, vector<1x128xf32>,
    %10 = arith.index_cast %6 : i32 to index
    %c0_4 = arith.constant 0 : index
    %11 = vector.load %arg15[%10, %c0_4] : memref<16x128xf32, #tpu.memory_space<vmem>>, vector<1x128xf32>
    %c0_5 = arith.constant 0 : index
    %c0_6 = arith.constant 0 : index
    %12 = vector.load %arg17[%c0_5, %c0_6] : memref<8x128xf32, #tpu.memory_space<vmem>>, vector<1x128xf32>
    tpu.vector_store %arg17[%c0_5, %c0_6], %11 {strides = array<i32>} : memref<8x128xf32, #tpu.memory_space<vmem>>, vector<1x128xf32>,
    %c8_i32_7 = arith.constant 8 : i32
    %13 = arith.muli %arg1, %c8_i32_7 : i32
    %c1_i32 = arith.constant 1 : i32
    %14 = arith.addi %13, %c1_i32 : i32
    %15 = arith.index_cast %14 : i32 to index
    %16 = memref.load %arg3[%15] : memref<24xi32, #tpu.memory_space<smem>>
    %17 = arith.index_cast %16 : i32 to index
    %c0_8 = arith.constant 0 : index
    %18 = vector.load %arg14[%17, %c0_8] : memref<16x128xf32, #tpu.memory_space<vmem>>, vector<1x128xf32>
    %c1 = arith.constant 1 : index
    %c0_9 = arith.constant 0 : index
    %19 = vector.load %arg16[%c1, %c0_9] : memref<8x128xf32, #tpu.memory_space<vmem>>, vector<1x128xf32>
    tpu.vector_store %arg16[%c1, %c0_9], %18 {strides = array<i32>} : memref<8x128xf32, #tpu.memory_space<vmem>>, vector<1x128xf32>,
    %20 = arith.index_cast %16 : i32 to index
    %c0_10 = arith.constant 0 : index
    %21 = vector.load %arg15[%20, %c0_10] : memref<16x128xf32, #tpu.memory_space<vmem>>, vector<1x128xf32>
    %c1_11 = arith.constant 1 : index
    %c0_12 = arith.constant 0 : index
    %22 = vector.load %arg17[%c1_11, %c0_12] : memref<8x128xf32, #tpu.memory_space<vmem>>, vector<1x128xf32>
    tpu.vector_store %arg17[%c1_11, %c0_12], %21 {strides = array<i32>} : memref<8x128xf32, #tpu.memory_space<vmem>>, vector<1x128xf32>,
    %c8_i32_13 = arith.constant 8 : i32
    %23 = arith.muli %arg1, %c8_i32_13 : i32
    %c2_i32 = arith.constant 2 : i32
    %24 = arith.addi %23, %c2_i32 : i32
    %25 = arith.index_cast %24 : i32 to index
    %26 = memref.load %arg3[%25] : memref<24xi32, #tpu.memory_space<smem>>
    %27 = arith.index_cast %26 : i32 to index
    %c0_14 = arith.constant 0 : index
    %28 = vector.load %arg14[%27, %c0_14] : memref<16x128xf32, #tpu.memory_space<vmem>>, vector<1x128xf32>
    %c2 = arith.constant 2 : index
    %c0_15 = arith.constant 0 : index
    %29 = vector.load %arg16[%c2, %c0_15] : memref<8x128xf32, #tpu.memory_space<vmem>>, vector<1x128xf32>
    tpu.vector_store %arg16[%c2, %c0_15], %28 {strides = array<i32>} : memref<8x128xf32, #tpu.memory_space<vmem>>, vector<1x128xf32>,
    %30 = arith.index_cast %26 : i32 to index
    %c0_16 = arith.constant 0 : index
    %31 = vector.load %arg15[%30, %c0_16] : memref<16x128xf32, #tpu.memory_space<vmem>>, vector<1x128xf32>
    %c2_17 = arith.constant 2 : index
    %c0_18 = arith.constant 0 : index
    %32 = vector.load %arg17[%c2_17, %c0_18] : memref<8x128xf32, #tpu.memory_space<vmem>>, vector<1x128xf32>
    tpu.vector_store %arg17[%c2_17, %c0_18], %31 {strides = array<i32>} : memref<8x128xf32, #tpu.memory_space<vmem>>, vector<1x128xf32>,
    %c8_i32_19 = arith.constant 8 : i32
    %33 = arith.muli %arg1, %c8_i32_19 : i32
    %c3_i32 = arith.constant 3 : i32
    %34 = arith.addi %33, %c3_i32 : i32
    %35 = arith.index_cast %34 : i32 to index
    %36 = memref.load %arg3[%35] : memref<24xi32, #tpu.memory_space<smem>>
    %37 = arith.index_cast %36 : i32 to index
    %c0_20 = arith.constant 0 : index
    %38 = vector.load %arg14[%37, %c0_20] : memref<16x128xf32, #tpu.memory_space<vmem>>, vector<1x128xf32>
    %c3 = arith.constant 3 : index
    %c0_21 = arith.constant 0 : index
    %39 = vector.load %arg16[%c3, %c0_21] : memref<8x128xf32, #tpu.memory_space<vmem>>, vector<1x128xf32>
    tpu.vector_store %arg16[%c3, %c0_21], %38 {strides = array<i32>} : memref<8x128xf32, #tpu.memory_space<vmem>>, vector<1x128xf32>,
    %40 = arith.index_cast %36 : i32 to index
    %c0_22 = arith.constant 0 : index
    %41 = vector.load %arg15[%40, %c0_22] : memref<16x128xf32, #tpu.memory_space<vmem>>, vector<1x128xf32>
    %c3_23 = arith.constant 3 : index
    %c0_24 = arith.constant 0 : index
    %42 = vector.load %arg17[%c3_23, %c0_24] : memref<8x128xf32, #tpu.memory_space<vmem>>, vector<1x128xf32>
    tpu.vector_store %arg17[%c3_23, %c0_24], %41 {strides = array<i32>} : memref<8x128xf32, #tpu.memory_space<vmem>>, vector<1x128xf32>,
    %c8_i32_25 = arith.constant 8 : i32
    %43 = arith.muli %arg1, %c8_i32_25 : i32
    %c4_i32 = arith.constant 4 : i32
    %44 = arith.addi %43, %c4_i32 : i32
    %45 = arith.index_cast %44 : i32 to index
    %46 = memref.load %arg3[%45] : memref<24xi32, #tpu.memory_space<smem>>
    %47 = arith.index_cast %46 : i32 to index
    %c0_26 = arith.constant 0 : index
    %48 = vector.load %arg14[%47, %c0_26] : memref<16x128xf32, #tpu.memory_space<vmem>>, vector<1x128xf32>
    %c4 = arith.constant 4 : index
    %c0_27 = arith.constant 0 : index
    %49 = vector.load %arg16[%c4, %c0_27] : memref<8x128xf32, #tpu.memory_space<vmem>>, vector<1x128xf32>
    tpu.vector_store %arg16[%c4, %c0_27], %48 {strides = array<i32>} : memref<8x128xf32, #tpu.memory_space<vmem>>, vector<1x128xf32>,
    %50 = arith.index_cast %46 : i32 to index
    %c0_28 = arith.constant 0 : index
    %51 = vector.load %arg15[%50, %c0_28] : memref<16x128xf32, #tpu.memory_space<vmem>>, vector<1x128xf32>
    %c4_29 = arith.constant 4 : index
    %c0_30 = arith.constant 0 : index
    %52 = vector.load %arg17[%c4_29, %c0_30] : memref<8x128xf32, #tpu.memory_space<vmem>>, vector<1x128xf32>
    tpu.vector_store %arg17[%c4_29, %c0_30], %51 {strides = array<i32>} : memref<8x128xf32, #tpu.memory_space<vmem>>, vector<1x128xf32>,
    %c8_i32_31 = arith.constant 8 : i32
    %53 = arith.muli %arg1, %c8_i32_31 : i32
    %c5_i32 = arith.constant 5 : i32
    %54 = arith.addi %53, %c5_i32 : i32
    %55 = arith.index_cast %54 : i32 to index
    %56 = memref.load %arg3[%55] : memref<24xi32, #tpu.memory_space<smem>>
    %57 = arith.index_cast %56 : i32 to index
    %c0_32 = arith.constant 0 : index
    %58 = vector.load %arg14[%57, %c0_32] : memref<16x128xf32, #tpu.memory_space<vmem>>, vector<1x128xf32>
    %c5 = arith.constant 5 : index
    %c0_33 = arith.constant 0 : index
    %59 = vector.load %arg16[%c5, %c0_33] : memref<8x128xf32, #tpu.memory_space<vmem>>, vector<1x128xf32>
    tpu.vector_store %arg16[%c5, %c0_33], %58 {strides = array<i32>} : memref<8x128xf32, #tpu.memory_space<vmem>>, vector<1x128xf32>,
    %60 = arith.index_cast %56 : i32 to index
    %c0_34 = arith.constant 0 : index
    %61 = vector.load %arg15[%60, %c0_34] : memref<16x128xf32, #tpu.memory_space<vmem>>, vector<1x128xf32>
    %c5_35 = arith.constant 5 : index
    %c0_36 = arith.constant 0 : index
    %62 = vector.load %arg17[%c5_35, %c0_36] : memref<8x128xf32, #tpu.memory_space<vmem>>, vector<1x128xf32>
    tpu.vector_store %arg17[%c5_35, %c0_36], %61 {strides = array<i32>} : memref<8x128xf32, #tpu.memory_space<vmem>>, vector<1x128xf32>,
    %c8_i32_37 = arith.constant 8 : i32
    %63 = arith.muli %arg1, %c8_i32_37 : i32
    %c6_i32 = arith.constant 6 : i32
    %64 = arith.addi %63, %c6_i32 : i32
    %65 = arith.index_cast %64 : i32 to index
    %66 = memref.load %arg3[%65] : memref<24xi32, #tpu.memory_space<smem>>
    %67 = arith.index_cast %66 : i32 to index
    %c0_38 = arith.constant 0 : index
    %68 = vector.load %arg14[%67, %c0_38] : memref<16x128xf32, #tpu.memory_space<vmem>>, vector<1x128xf32>
    %c6 = arith.constant 6 : index
    %c0_39 = arith.constant 0 : index
    %69 = vector.load %arg16[%c6, %c0_39] : memref<8x128xf32, #tpu.memory_space<vmem>>, vector<1x128xf32>
    tpu.vector_store %arg16[%c6, %c0_39], %68 {strides = array<i32>} : memref<8x128xf32, #tpu.memory_space<vmem>>, vector<1x128xf32>,
    %70 = arith.index_cast %66 : i32 to index
    %c0_40 = arith.constant 0 : index
    %71 = vector.load %arg15[%70, %c0_40] : memref<16x128xf32, #tpu.memory_space<vmem>>, vector<1x128xf32>
    %c6_41 = arith.constant 6 : index
    %c0_42 = arith.constant 0 : index
    %72 = vector.load %arg17[%c6_41, %c0_42] : memref<8x128xf32, #tpu.memory_space<vmem>>, vector<1x128xf32>
    tpu.vector_store %arg17[%c6_41, %c0_42], %71 {strides = array<i32>} : memref<8x128xf32, #tpu.memory_space<vmem>>, vector<1x128xf32>,
    %c8_i32_43 = arith.constant 8 : i32
    %73 = arith.muli %arg1, %c8_i32_43 : i32
    %c7_i32 = arith.constant 7 : i32
    %74 = arith.addi %73, %c7_i32 : i32
    %75 = arith.index_cast %74 : i32 to index
    %76 = memref.load %arg3[%75] : memref<24xi32, #tpu.memory_space<smem>>
    %77 = arith.index_cast %76 : i32 to index
    %c0_44 = arith.constant 0 : index
    %78 = vector.load %arg14[%77, %c0_44] : memref<16x128xf32, #tpu.memory_space<vmem>>, vector<1x128xf32>
    %c7 = arith.constant 7 : index
    %c0_45 = arith.constant 0 : index
    %79 = vector.load %arg16[%c7, %c0_45] : memref<8x128xf32, #tpu.memory_space<vmem>>, vector<1x128xf32>
    tpu.vector_store %arg16[%c7, %c0_45], %78 {strides = array<i32>} : memref<8x128xf32, #tpu.memory_space<vmem>>, vector<1x128xf32>,
    %80 = arith.index_cast %76 : i32 to index
    %c0_46 = arith.constant 0 : index
    %81 = vector.load %arg15[%80, %c0_46] : memref<16x128xf32, #tpu.memory_space<vmem>>, vector<1x128xf32>
    %c7_47 = arith.constant 7 : index
    %c0_48 = arith.constant 0 : index
    %82 = vector.load %arg17[%c7_47, %c0_48] : memref<8x128xf32, #tpu.memory_space<vmem>>, vector<1x128xf32>
    tpu.vector_store %arg17[%c7_47, %c0_48], %81 {strides = array<i32>} : memref<8x128xf32, #tpu.memory_space<vmem>>, vector<1x128xf32>,
    %c0_49 = arith.constant 0 : index
    %c0_50 = arith.constant 0 : index
    %c0_51 = arith.constant 0 : index
    %83 = vector.load %arg5[%c0_49, %c0_50, %c0_51] : memref<1x8x16xf32, #tpu.memory_space<vmem>>, vector<1x8x16xf32>
    %84 = vector.shape_cast %83 : vector<1x8x16xf32> to vector<8x16xf32>
    %c0_52 = arith.constant 0 : index
    %c0_53 = arith.constant 0 : index
    %c0_54 = arith.constant 0 : index
    %85 = vector.load %arg6[%c0_52, %c0_53, %c0_54] : memref<1x8x8xf32, #tpu.memory_space<vmem>>, vector<1x8x8xf32>
    %86 = vector.shape_cast %85 : vector<1x8x8xf32> to vector<8x8xf32>
    %c0_55 = arith.constant 0 : index
    %c0_56 = arith.constant 0 : index
    %c0_57 = arith.constant 0 : index
    %87 = vector.load %arg7[%c0_55, %c0_56, %c0_57] : memref<1x8x8xf32, #tpu.memory_space<vmem>>, vector<1x8x8xf32>
    %88 = vector.shape_cast %87 : vector<1x8x8xf32> to vector<8x8xf32>
    %c0_58 = arith.constant 0 : index
    %c0_59 = arith.constant 0 : index
    %89 = vector.load %arg16[%c0_58, %c0_59] : memref<8x128xf32, #tpu.memory_space<vmem>>, vector<8x128xf32>
    %c0_60 = arith.constant 0 : index
    %c0_61 = arith.constant 0 : index
    %90 = vector.load %arg17[%c0_60, %c0_61] : memref<8x128xf32, #tpu.memory_space<vmem>>, vector<8x128xf32>
    %c0_62 = arith.constant 0 : index
    %c0_63 = arith.constant 0 : index
    %c0_64 = arith.constant 0 : index
    %91 = vector.load %arg8[%c0_62, %c0_63, %c0_64] : memref<1x16x512xf32, #tpu.memory_space<vmem>>, vector<1x16x512xf32>
    %92 = vector.shape_cast %91 : vector<1x16x512xf32> to vector<16x512xf32>
    %cst = arith.constant dense<0.000000e+00> : vector<8x512xf32>
    %93 = tpu.matmul %84, %92, %cst {dimension_numbers = #tpu.dot_dimension_numbers<[1], [0], [0], [1], [0, 0, 1, 1], [], []>} : vector<8x16xf32>, vector<16x512xf32>, vector<8x512xf32> -> vector<8x512xf32>
    %c0_65 = arith.constant 0 : index
    %c0_66 = arith.constant 0 : index
    %c0_67 = arith.constant 0 : index
    %94 = vector.load %arg9[%c0_65, %c0_66, %c0_67] : memref<1x1x512xf32, #tpu.memory_space<vmem>>, vector<1x1x512xf32>
    %95 = vector.shape_cast %94 : vector<1x1x512xf32> to vector<1x512xf32>
    %96 = vector.broadcast %95 : vector<1x512xf32> to vector<8x512xf32>
    %97 = arith.addf %93, %96 : vector<8x512xf32>
    %cst_68 = arith.constant dense<0.000000e+00> : vector<8x128xf32>
    %98 = tpu.matmul %86, %89, %cst_68 {dimension_numbers = #tpu.dot_dimension_numbers<[1], [0], [0], [1], [0, 0, 1, 1], [], []>} : vector<8x8xf32>, vector<8x128xf32>, vector<8x128xf32> -> vector<8x128xf32>
    %99 = vector.extract_strided_slice %97 {offsets = [0, 0], sizes = [8, 384], strides = [1, 1]} : vector<8x512xf32> to vector<8x384xf32>
    %c0_69 = arith.constant 0 : index
    %c0_70 = arith.constant 0 : index
    %c0_71 = arith.constant 0 : index
    %100 = vector.load %arg10[%c0_69, %c0_70, %c0_71] : memref<1x128x384xf32, #tpu.memory_space<vmem>>, vector<1x128x384xf32>
    %101 = vector.shape_cast %100 : vector<1x128x384xf32> to vector<128x384xf32>
    %cst_72 = arith.constant dense<0.000000e+00> : vector<8x384xf32>
    %102 = tpu.matmul %98, %101, %cst_72 {dimension_numbers = #tpu.dot_dimension_numbers<[1], [0], [0], [1], [0, 0, 1, 1], [], []>} : vector<8x128xf32>, vector<128x384xf32>, vector<8x384xf32> -> vector<8x384xf32>
    %103 = arith.addf %99, %102 : vector<8x384xf32>
    %104 = vector.extract_strided_slice %103 {offsets = [0, 0], sizes = [8, 128], strides = [1, 1]} : vector<8x384xf32> to vector<8x128xf32>
    %105 = arith.negf %104 : vector<8x128xf32>
    %106 = math.exp %105 : vector<8x128xf32>
    %cst_73 = arith.constant 1.000000e+00 : f32
    %107 = vector.broadcast %cst_73 : f32 to vector<8x128xf32>
    %108 = arith.addf %107, %106 : vector<8x128xf32>
    %109 = arith.divf %107, %108 : vector<8x128xf32>
    %110 = vector.extract_strided_slice %103 {offsets = [0, 128], sizes = [8, 128], strides = [1, 1]} : vector<8x384xf32> to vector<8x128xf32>
    %111 = arith.negf %110 : vector<8x128xf32>
    %112 = math.exp %111 : vector<8x128xf32>
    %cst_74 = arith.constant 1.000000e+00 : f32
    %113 = vector.broadcast %cst_74 : f32 to vector<8x128xf32>
    %114 = arith.addf %113, %112 : vector<8x128xf32>
    %115 = arith.divf %113, %114 : vector<8x128xf32>
    %116 = vector.extract_strided_slice %103 {offsets = [0, 256], sizes = [8, 128], strides = [1, 1]} : vector<8x384xf32> to vector<8x128xf32>
    %117 = math.tanh %116 : vector<8x128xf32>
    %118 = vector.extract_strided_slice %97 {offsets = [0, 384], sizes = [8, 128], strides = [1, 1]} : vector<8x512xf32> to vector<8x128xf32>
    %cst_75 = arith.constant dense<0.000000e+00> : vector<8x128xf32>
    %119 = tpu.matmul %88, %118, %cst_75 {dimension_numbers = #tpu.dot_dimension_numbers<[1], [0], [0], [1], [0, 0, 1, 1], [], []>} : vector<8x8xf32>, vector<8x128xf32>, vector<8x128xf32> -> vector<8x128xf32>
    %c0_76 = arith.constant 0 : index
    %c0_77 = arith.constant 0 : index
    %c0_78 = arith.constant 0 : index
    %120 = vector.load %arg11[%c0_76, %c0_77, %c0_78] : memref<1x128x128xf32, #tpu.memory_space<vmem>>, vector<1x128x128xf32>
    %121 = vector.shape_cast %120 : vector<1x128x128xf32> to vector<128x128xf32>
    %cst_79 = arith.constant dense<0.000000e+00> : vector<8x128xf32>
    %122 = tpu.matmul %89, %121, %cst_79 {dimension_numbers = #tpu.dot_dimension_numbers<[1], [0], [0], [1], [0, 0, 1, 1], [], []>} : vector<8x128xf32>, vector<128x128xf32>, vector<8x128xf32> -> vector<8x128xf32>
    %123 = arith.addf %119, %122 : vector<8x128xf32>
    %124 = arith.negf %123 : vector<8x128xf32>
    %125 = math.exp %124 : vector<8x128xf32>
    %cst_80 = arith.constant 1.000000e+00 : f32
    %126 = vector.broadcast %cst_80 : f32 to vector<8x128xf32>
    %127 = arith.addf %126, %125 : vector<8x128xf32>
    %128 = arith.divf %126, %127 : vector<8x128xf32>
    %129 = arith.mulf %128, %90 : vector<8x128xf32>
    %cst_81 = arith.constant dense<0.000000e+00> : vector<8x128xf32>
    %130 = tpu.matmul %86, %129, %cst_81 {dimension_numbers = #tpu.dot_dimension_numbers<[1], [0], [0], [1], [0, 0, 1, 1], [], []>} : vector<8x8xf32>, vector<8x128xf32>, vector<8x128xf32> -> vector<8x128xf32>
    %131 = arith.mulf %109, %117 : vector<8x128xf32>
    %132 = arith.addf %131, %130 : vector<8x128xf32>
    %133 = math.tanh %132 : vector<8x128xf32>
    %134 = arith.mulf %115, %133 : vector<8x128xf32>
    %c0_82 = arith.constant 0 : index
    %c0_83 = arith.constant 0 : index
    %135 = vector.load %arg18[%c0_82, %c0_83] : memref<8x128xf32, #tpu.memory_space<vmem>>, vector<8x128xf32>
    tpu.vector_store %arg18[%c0_82, %c0_83], %134 {strides = array<i32>} : memref<8x128xf32, #tpu.memory_space<vmem>>, vector<8x128xf32>,
    %c0_84 = arith.constant 0 : index
    %c0_85 = arith.constant 0 : index
    %136 = vector.load %arg19[%c0_84, %c0_85] : memref<8x128xf32, #tpu.memory_space<vmem>>, vector<8x128xf32>
    tpu.vector_store %arg19[%c0_84, %c0_85], %132 {strides = array<i32>} : memref<8x128xf32, #tpu.memory_space<vmem>>, vector<8x128xf32>,
    %c8_i32_86 = arith.constant 8 : i32
    %137 = arith.muli %arg1, %c8_i32_86 : i32
    %c0_i32_87 = arith.constant 0 : i32
    %138 = arith.addi %137, %c0_i32_87 : i32
    %139 = arith.index_cast %138 : i32 to index
    %140 = memref.load %arg2[%139] : memref<24xi32, #tpu.memory_space<smem>>
    %c0_88 = arith.constant 0 : index
    %c0_89 = arith.constant 0 : index
    %141 = vector.load %arg18[%c0_88, %c0_89] : memref<8x128xf32, #tpu.memory_space<vmem>>, vector<1x128xf32>
    %142 = arith.index_cast %140 : i32 to index
    %c0_90 = arith.constant 0 : index
    %143 = vector.load %arg14[%142, %c0_90] : memref<16x128xf32, #tpu.memory_space<vmem>>, vector<1x128xf32>
    tpu.vector_store %arg14[%142, %c0_90], %141 {strides = array<i32>} : memref<16x128xf32, #tpu.memory_space<vmem>>, vector<1x128xf32>,
    %c0_91 = arith.constant 0 : index
    %c0_92 = arith.constant 0 : index
    %144 = vector.load %arg19[%c0_91, %c0_92] : memref<8x128xf32, #tpu.memory_space<vmem>>, vector<1x128xf32>
    %145 = arith.index_cast %140 : i32 to index
    %c0_93 = arith.constant 0 : index
    %146 = vector.load %arg15[%145, %c0_93] : memref<16x128xf32, #tpu.memory_space<vmem>>, vector<1x128xf32>
    tpu.vector_store %arg15[%145, %c0_93], %144 {strides = array<i32>} : memref<16x128xf32, #tpu.memory_space<vmem>>, vector<1x128xf32>,
    %c8_i32_94 = arith.constant 8 : i32
    %147 = arith.muli %arg1, %c8_i32_94 : i32
    %c1_i32_95 = arith.constant 1 : i32
    %148 = arith.addi %147, %c1_i32_95 : i32
    %149 = arith.index_cast %148 : i32 to index
    %150 = memref.load %arg2[%149] : memref<24xi32, #tpu.memory_space<smem>>
    %c1_96 = arith.constant 1 : index
    %c0_97 = arith.constant 0 : index
    %151 = vector.load %arg18[%c1_96, %c0_97] : memref<8x128xf32, #tpu.memory_space<vmem>>, vector<1x128xf32>
    %152 = arith.index_cast %150 : i32 to index
    %c0_98 = arith.constant 0 : index
    %153 = vector.load %arg14[%152, %c0_98] : memref<16x128xf32, #tpu.memory_space<vmem>>, vector<1x128xf32>
    tpu.vector_store %arg14[%152, %c0_98], %151 {strides = array<i32>} : memref<16x128xf32, #tpu.memory_space<vmem>>, vector<1x128xf32>,
    %c1_99 = arith.constant 1 : index
    %c0_100 = arith.constant 0 : index
    %154 = vector.load %arg19[%c1_99, %c0_100] : memref<8x128xf32, #tpu.memory_space<vmem>>, vector<1x128xf32>
    %155 = arith.index_cast %150 : i32 to index
    %c0_101 = arith.constant 0 : index
    %156 = vector.load %arg15[%155, %c0_101] : memref<16x128xf32, #tpu.memory_space<vmem>>, vector<1x128xf32>
    tpu.vector_store %arg15[%155, %c0_101], %154 {strides = array<i32>} : memref<16x128xf32, #tpu.memory_space<vmem>>, vector<1x128xf32>,
    %c8_i32_102 = arith.constant 8 : i32
    %157 = arith.muli %arg1, %c8_i32_102 : i32
    %c2_i32_103 = arith.constant 2 : i32
    %158 = arith.addi %157, %c2_i32_103 : i32
    %159 = arith.index_cast %158 : i32 to index
    %160 = memref.load %arg2[%159] : memref<24xi32, #tpu.memory_space<smem>>
    %c2_104 = arith.constant 2 : index
    %c0_105 = arith.constant 0 : index
    %161 = vector.load %arg18[%c2_104, %c0_105] : memref<8x128xf32, #tpu.memory_space<vmem>>, vector<1x128xf32>
    %162 = arith.index_cast %160 : i32 to index
    %c0_106 = arith.constant 0 : index
    %163 = vector.load %arg14[%162, %c0_106] : memref<16x128xf32, #tpu.memory_space<vmem>>, vector<1x128xf32>
    tpu.vector_store %arg14[%162, %c0_106], %161 {strides = array<i32>} : memref<16x128xf32, #tpu.memory_space<vmem>>, vector<1x128xf32>,
    %c2_107 = arith.constant 2 : index
    %c0_108 = arith.constant 0 : index
    %164 = vector.load %arg19[%c2_107, %c0_108] : memref<8x128xf32, #tpu.memory_space<vmem>>, vector<1x128xf32>
    %165 = arith.index_cast %160 : i32 to index
    %c0_109 = arith.constant 0 : index
    %166 = vector.load %arg15[%165, %c0_109] : memref<16x128xf32, #tpu.memory_space<vmem>>, vector<1x128xf32>
    tpu.vector_store %arg15[%165, %c0_109], %164 {strides = array<i32>} : memref<16x128xf32, #tpu.memory_space<vmem>>, vector<1x128xf32>,
    %c8_i32_110 = arith.constant 8 : i32
    %167 = arith.muli %arg1, %c8_i32_110 : i32
    %c3_i32_111 = arith.constant 3 : i32
    %168 = arith.addi %167, %c3_i32_111 : i32
    %169 = arith.index_cast %168 : i32 to index
    %170 = memref.load %arg2[%169] : memref<24xi32, #tpu.memory_space<smem>>
    %c3_112 = arith.constant 3 : index
    %c0_113 = arith.constant 0 : index
    %171 = vector.load %arg18[%c3_112, %c0_113] : memref<8x128xf32, #tpu.memory_space<vmem>>, vector<1x128xf32>
    %172 = arith.index_cast %170 : i32 to index
    %c0_114 = arith.constant 0 : index
    %173 = vector.load %arg14[%172, %c0_114] : memref<16x128xf32, #tpu.memory_space<vmem>>, vector<1x128xf32>
    tpu.vector_store %arg14[%172, %c0_114], %171 {strides = array<i32>} : memref<16x128xf32, #tpu.memory_space<vmem>>, vector<1x128xf32>,
    %c3_115 = arith.constant 3 : index
    %c0_116 = arith.constant 0 : index
    %174 = vector.load %arg19[%c3_115, %c0_116] : memref<8x128xf32, #tpu.memory_space<vmem>>, vector<1x128xf32>
    %175 = arith.index_cast %170 : i32 to index
    %c0_117 = arith.constant 0 : index
    %176 = vector.load %arg15[%175, %c0_117] : memref<16x128xf32, #tpu.memory_space<vmem>>, vector<1x128xf32>
    tpu.vector_store %arg15[%175, %c0_117], %174 {strides = array<i32>} : memref<16x128xf32, #tpu.memory_space<vmem>>, vector<1x128xf32>,
    %c8_i32_118 = arith.constant 8 : i32
    %177 = arith.muli %arg1, %c8_i32_118 : i32
    %c4_i32_119 = arith.constant 4 : i32
    %178 = arith.addi %177, %c4_i32_119 : i32
    %179 = arith.index_cast %178 : i32 to index
    %180 = memref.load %arg2[%179] : memref<24xi32, #tpu.memory_space<smem>>
    %c4_120 = arith.constant 4 : index
    %c0_121 = arith.constant 0 : index
    %181 = vector.load %arg18[%c4_120, %c0_121] : memref<8x128xf32, #tpu.memory_space<vmem>>, vector<1x128xf32>
    %182 = arith.index_cast %180 : i32 to index
    %c0_122 = arith.constant 0 : index
    %183 = vector.load %arg14[%182, %c0_122] : memref<16x128xf32, #tpu.memory_space<vmem>>, vector<1x128xf32>
    tpu.vector_store %arg14[%182, %c0_122], %181 {strides = array<i32>} : memref<16x128xf32, #tpu.memory_space<vmem>>, vector<1x128xf32>,
    %c4_123 = arith.constant 4 : index
    %c0_124 = arith.constant 0 : index
    %184 = vector.load %arg19[%c4_123, %c0_124] : memref<8x128xf32, #tpu.memory_space<vmem>>, vector<1x128xf32>
    %185 = arith.index_cast %180 : i32 to index
    %c0_125 = arith.constant 0 : index
    %186 = vector.load %arg15[%185, %c0_125] : memref<16x128xf32, #tpu.memory_space<vmem>>, vector<1x128xf32>
    tpu.vector_store %arg15[%185, %c0_125], %184 {strides = array<i32>} : memref<16x128xf32, #tpu.memory_space<vmem>>, vector<1x128xf32>,
    %c8_i32_126 = arith.constant 8 : i32
    %187 = arith.muli %arg1, %c8_i32_126 : i32
    %c5_i32_127 = arith.constant 5 : i32
    %188 = arith.addi %187, %c5_i32_127 : i32
    %189 = arith.index_cast %188 : i32 to index
    %190 = memref.load %arg2[%189] : memref<24xi32, #tpu.memory_space<smem>>
    %c5_128 = arith.constant 5 : index
    %c0_129 = arith.constant 0 : index
    %191 = vector.load %arg18[%c5_128, %c0_129] : memref<8x128xf32, #tpu.memory_space<vmem>>, vector<1x128xf32>
    %192 = arith.index_cast %190 : i32 to index
    %c0_130 = arith.constant 0 : index
    %193 = vector.load %arg14[%192, %c0_130] : memref<16x128xf32, #tpu.memory_space<vmem>>, vector<1x128xf32>
    tpu.vector_store %arg14[%192, %c0_130], %191 {strides = array<i32>} : memref<16x128xf32, #tpu.memory_space<vmem>>, vector<1x128xf32>,
    %c5_131 = arith.constant 5 : index
    %c0_132 = arith.constant 0 : index
    %194 = vector.load %arg19[%c5_131, %c0_132] : memref<8x128xf32, #tpu.memory_space<vmem>>, vector<1x128xf32>
    %195 = arith.index_cast %190 : i32 to index
    %c0_133 = arith.constant 0 : index
    %196 = vector.load %arg15[%195, %c0_133] : memref<16x128xf32, #tpu.memory_space<vmem>>, vector<1x128xf32>
    tpu.vector_store %arg15[%195, %c0_133], %194 {strides = array<i32>} : memref<16x128xf32, #tpu.memory_space<vmem>>, vector<1x128xf32>,
    %c8_i32_134 = arith.constant 8 : i32
    %197 = arith.muli %arg1, %c8_i32_134 : i32
    %c6_i32_135 = arith.constant 6 : i32
    %198 = arith.addi %197, %c6_i32_135 : i32
    %199 = arith.index_cast %198 : i32 to index
    %200 = memref.load %arg2[%199] : memref<24xi32, #tpu.memory_space<smem>>
    %c6_136 = arith.constant 6 : index
    %c0_137 = arith.constant 0 : index
    %201 = vector.load %arg18[%c6_136, %c0_137] : memref<8x128xf32, #tpu.memory_space<vmem>>, vector<1x128xf32>
    %202 = arith.index_cast %200 : i32 to index
    %c0_138 = arith.constant 0 : index
    %203 = vector.load %arg14[%202, %c0_138] : memref<16x128xf32, #tpu.memory_space<vmem>>, vector<1x128xf32>
    tpu.vector_store %arg14[%202, %c0_138], %201 {strides = array<i32>} : memref<16x128xf32, #tpu.memory_space<vmem>>, vector<1x128xf32>,
    %c6_139 = arith.constant 6 : index
    %c0_140 = arith.constant 0 : index
    %204 = vector.load %arg19[%c6_139, %c0_140] : memref<8x128xf32, #tpu.memory_space<vmem>>, vector<1x128xf32>
    %205 = arith.index_cast %200 : i32 to index
    %c0_141 = arith.constant 0 : index
    %206 = vector.load %arg15[%205, %c0_141] : memref<16x128xf32, #tpu.memory_space<vmem>>, vector<1x128xf32>
    tpu.vector_store %arg15[%205, %c0_141], %204 {strides = array<i32>} : memref<16x128xf32, #tpu.memory_space<vmem>>, vector<1x128xf32>,
    %c8_i32_142 = arith.constant 8 : i32
    %207 = arith.muli %arg1, %c8_i32_142 : i32
    %c7_i32_143 = arith.constant 7 : i32
    %208 = arith.addi %207, %c7_i32_143 : i32
    %209 = arith.index_cast %208 : i32 to index
    %210 = memref.load %arg2[%209] : memref<24xi32, #tpu.memory_space<smem>>
    %c7_144 = arith.constant 7 : index
    %c0_145 = arith.constant 0 : index
    %211 = vector.load %arg18[%c7_144, %c0_145] : memref<8x128xf32, #tpu.memory_space<vmem>>, vector<1x128xf32>
    %212 = arith.index_cast %210 : i32 to index
    %c0_146 = arith.constant 0 : index
    %213 = vector.load %arg14[%212, %c0_146] : memref<16x128xf32, #tpu.memory_space<vmem>>, vector<1x128xf32>
    tpu.vector_store %arg14[%212, %c0_146], %211 {strides = array<i32>} : memref<16x128xf32, #tpu.memory_space<vmem>>, vector<1x128xf32>,
    %c7_147 = arith.constant 7 : index
    %c0_148 = arith.constant 0 : index
    %214 = vector.load %arg19[%c7_147, %c0_148] : memref<8x128xf32, #tpu.memory_space<vmem>>, vector<1x128xf32>
    %215 = arith.index_cast %210 : i32 to index
    %c0_149 = arith.constant 0 : index
    %216 = vector.load %arg15[%215, %c0_149] : memref<16x128xf32, #tpu.memory_space<vmem>>, vector<1x128xf32>
    tpu.vector_store %arg15[%215, %c0_149], %214 {strides = array<i32>} : memref<16x128xf32, #tpu.memory_space<vmem>>, vector<1x128xf32>,
    %c2_i32_150 = arith.constant 2 : i32
    %217 = arith.cmpi eq, %arg1, %c2_i32_150 : i32
    %218 = arith.extui %217 : i1 to i32
    %c0_i32_151 = arith.constant 0 : i32
    %219 = arith.cmpi ne, %218, %c0_i32_151 : i32
    scf.if %219 {
      %c0_152 = arith.constant 0 : index
      %220 = memref.load %arg4[%c0_152] : memref<8xi32, #tpu.memory_space<smem>>
      %221 = arith.index_cast %220 : i32 to index
      %c0_153 = arith.constant 0 : index
      %222 = vector.load %arg14[%221, %c0_153] : memref<16x128xf32, #tpu.memory_space<vmem>>, vector<1x128xf32>
      %c0_154 = arith.constant 0 : index
      %c0_155 = arith.constant 0 : index
      %c0_156 = arith.constant 0 : index
      %223 = vector.load %arg12[%c0_154, %c0_155, %c0_156] : memref<1x8x128xf32, #tpu.memory_space<vmem>>, vector<1x1x128xf32>
      %224 = vector.shape_cast %223 : vector<1x1x128xf32> to vector<1x128xf32>
      %225 = vector.shape_cast %222 : vector<1x128xf32> to vector<1x1x128xf32>
      tpu.vector_store %arg12[%c0_154, %c0_155, %c0_156], %225 {strides = array<i32>} : memref<1x8x128xf32, #tpu.memory_space<vmem>>, vector<1x1x128xf32>,
      %226 = arith.index_cast %220 : i32 to index
      %c0_157 = arith.constant 0 : index
      %227 = vector.load %arg15[%226, %c0_157] : memref<16x128xf32, #tpu.memory_space<vmem>>, vector<1x128xf32>
      %c0_158 = arith.constant 0 : index
      %c0_159 = arith.constant 0 : index
      %c0_160 = arith.constant 0 : index
      %228 = vector.load %arg13[%c0_158, %c0_159, %c0_160] : memref<1x8x128xf32, #tpu.memory_space<vmem>>, vector<1x1x128xf32>
      %229 = vector.shape_cast %228 : vector<1x1x128xf32> to vector<1x128xf32>
      %230 = vector.shape_cast %227 : vector<1x128xf32> to vector<1x1x128xf32>
      tpu.vector_store %arg13[%c0_158, %c0_159, %c0_160], %230 {strides = array<i32>} : memref<1x8x128xf32, #tpu.memory_space<vmem>>, vector<1x1x128xf32>,
      %c1_161 = arith.constant 1 : index
      %231 = memref.load %arg4[%c1_161] : memref<8xi32, #tpu.memory_space<smem>>
      %232 = arith.index_cast %231 : i32 to index
      %c0_162 = arith.constant 0 : index
      %233 = vector.load %arg14[%232, %c0_162] : memref<16x128xf32, #tpu.memory_space<vmem>>, vector<1x128xf32>
      %c0_163 = arith.constant 0 : index
      %c1_164 = arith.constant 1 : index
      %c0_165 = arith.constant 0 : index
      %234 = vector.load %arg12[%c0_163, %c1_164, %c0_165] : memref<1x8x128xf32, #tpu.memory_space<vmem>>, vector<1x1x128xf32>
      %235 = vector.shape_cast %234 : vector<1x1x128xf32> to vector<1x128xf32>
      %236 = vector.shape_cast %233 : vector<1x128xf32> to vector<1x1x128xf32>
      tpu.vector_store %arg12[%c0_163, %c1_164, %c0_165], %236 {strides = array<i32>} : memref<1x8x128xf32, #tpu.memory_space<vmem>>, vector<1x1x128xf32>,
      %237 = arith.index_cast %231 : i32 to index
      %c0_166 = arith.constant 0 : index
      %238 = vector.load %arg15[%237, %c0_166] : memref<16x128xf32, #tpu.memory_space<vmem>>, vector<1x128xf32>
      %c0_167 = arith.constant 0 : index
      %c1_168 = arith.constant 1 : index
      %c0_169 = arith.constant 0 : index
      %239 = vector.load %arg13[%c0_167, %c1_168, %c0_169] : memref<1x8x128xf32, #tpu.memory_space<vmem>>, vector<1x1x128xf32>
      %240 = vector.shape_cast %239 : vector<1x1x128xf32> to vector<1x128xf32>
      %241 = vector.shape_cast %238 : vector<1x128xf32> to vector<1x1x128xf32>
      tpu.vector_store %arg13[%c0_167, %c1_168, %c0_169], %241 {strides = array<i32>} : memref<1x8x128xf32, #tpu.memory_space<vmem>>, vector<1x1x128xf32>,
      %c2_170 = arith.constant 2 : index
      %242 = memref.load %arg4[%c2_170] : memref<8xi32, #tpu.memory_space<smem>>
      %243 = arith.index_cast %242 : i32 to index
      %c0_171 = arith.constant 0 : index
      %244 = vector.load %arg14[%243, %c0_171] : memref<16x128xf32, #tpu.memory_space<vmem>>, vector<1x128xf32>
      %c0_172 = arith.constant 0 : index
      %c2_173 = arith.constant 2 : index
      %c0_174 = arith.constant 0 : index
      %245 = vector.load %arg12[%c0_172, %c2_173, %c0_174] : memref<1x8x128xf32, #tpu.memory_space<vmem>>, vector<1x1x128xf32>
      %246 = vector.shape_cast %245 : vector<1x1x128xf32> to vector<1x128xf32>
      %247 = vector.shape_cast %244 : vector<1x128xf32> to vector<1x1x128xf32>
      tpu.vector_store %arg12[%c0_172, %c2_173, %c0_174], %247 {strides = array<i32>} : memref<1x8x128xf32, #tpu.memory_space<vmem>>, vector<1x1x128xf32>,
      %248 = arith.index_cast %242 : i32 to index
      %c0_175 = arith.constant 0 : index
      %249 = vector.load %arg15[%248, %c0_175] : memref<16x128xf32, #tpu.memory_space<vmem>>, vector<1x128xf32>
      %c0_176 = arith.constant 0 : index
      %c2_177 = arith.constant 2 : index
      %c0_178 = arith.constant 0 : index
      %250 = vector.load %arg13[%c0_176, %c2_177, %c0_178] : memref<1x8x128xf32, #tpu.memory_space<vmem>>, vector<1x1x128xf32>
      %251 = vector.shape_cast %250 : vector<1x1x128xf32> to vector<1x128xf32>
      %252 = vector.shape_cast %249 : vector<1x128xf32> to vector<1x1x128xf32>
      tpu.vector_store %arg13[%c0_176, %c2_177, %c0_178], %252 {strides = array<i32>} : memref<1x8x128xf32, #tpu.memory_space<vmem>>, vector<1x1x128xf32>,
      %c3_179 = arith.constant 3 : index
      %253 = memref.load %arg4[%c3_179] : memref<8xi32, #tpu.memory_space<smem>>
      %254 = arith.index_cast %253 : i32 to index
      %c0_180 = arith.constant 0 : index
      %255 = vector.load %arg14[%254, %c0_180] : memref<16x128xf32, #tpu.memory_space<vmem>>, vector<1x128xf32>
      %c0_181 = arith.constant 0 : index
      %c3_182 = arith.constant 3 : index
      %c0_183 = arith.constant 0 : index
      %256 = vector.load %arg12[%c0_181, %c3_182, %c0_183] : memref<1x8x128xf32, #tpu.memory_space<vmem>>, vector<1x1x128xf32>
      %257 = vector.shape_cast %256 : vector<1x1x128xf32> to vector<1x128xf32>
      %258 = vector.shape_cast %255 : vector<1x128xf32> to vector<1x1x128xf32>
      tpu.vector_store %arg12[%c0_181, %c3_182, %c0_183], %258 {strides = array<i32>} : memref<1x8x128xf32, #tpu.memory_space<vmem>>, vector<1x1x128xf32>,
      %259 = arith.index_cast %253 : i32 to index
      %c0_184 = arith.constant 0 : index
      %260 = vector.load %arg15[%259, %c0_184] : memref<16x128xf32, #tpu.memory_space<vmem>>, vector<1x128xf32>
      %c0_185 = arith.constant 0 : index
      %c3_186 = arith.constant 3 : index
      %c0_187 = arith.constant 0 : index
      %261 = vector.load %arg13[%c0_185, %c3_186, %c0_187] : memref<1x8x128xf32, #tpu.memory_space<vmem>>, vector<1x1x128xf32>
      %262 = vector.shape_cast %261 : vector<1x1x128xf32> to vector<1x128xf32>
      %263 = vector.shape_cast %260 : vector<1x128xf32> to vector<1x1x128xf32>
      tpu.vector_store %arg13[%c0_185, %c3_186, %c0_187], %263 {strides = array<i32>} : memref<1x8x128xf32, #tpu.memory_space<vmem>>, vector<1x1x128xf32>,
      %c4_188 = arith.constant 4 : index
      %264 = memref.load %arg4[%c4_188] : memref<8xi32, #tpu.memory_space<smem>>
      %265 = arith.index_cast %264 : i32 to index
      %c0_189 = arith.constant 0 : index
      %266 = vector.load %arg14[%265, %c0_189] : memref<16x128xf32, #tpu.memory_space<vmem>>, vector<1x128xf32>
      %c0_190 = arith.constant 0 : index
      %c4_191 = arith.constant 4 : index
      %c0_192 = arith.constant 0 : index
      %267 = vector.load %arg12[%c0_190, %c4_191, %c0_192] : memref<1x8x128xf32, #tpu.memory_space<vmem>>, vector<1x1x128xf32>
      %268 = vector.shape_cast %267 : vector<1x1x128xf32> to vector<1x128xf32>
      %269 = vector.shape_cast %266 : vector<1x128xf32> to vector<1x1x128xf32>
      tpu.vector_store %arg12[%c0_190, %c4_191, %c0_192], %269 {strides = array<i32>} : memref<1x8x128xf32, #tpu.memory_space<vmem>>, vector<1x1x128xf32>,
      %270 = arith.index_cast %264 : i32 to index
      %c0_193 = arith.constant 0 : index
      %271 = vector.load %arg15[%270, %c0_193] : memref<16x128xf32, #tpu.memory_space<vmem>>, vector<1x128xf32>
      %c0_194 = arith.constant 0 : index
      %c4_195 = arith.constant 4 : index
      %c0_196 = arith.constant 0 : index
      %272 = vector.load %arg13[%c0_194, %c4_195, %c0_196] : memref<1x8x128xf32, #tpu.memory_space<vmem>>, vector<1x1x128xf32>
      %273 = vector.shape_cast %272 : vector<1x1x128xf32> to vector<1x128xf32>
      %274 = vector.shape_cast %271 : vector<1x128xf32> to vector<1x1x128xf32>
      tpu.vector_store %arg13[%c0_194, %c4_195, %c0_196], %274 {strides = array<i32>} : memref<1x8x128xf32, #tpu.memory_space<vmem>>, vector<1x1x128xf32>,
      %c5_197 = arith.constant 5 : index
      %275 = memref.load %arg4[%c5_197] : memref<8xi32, #tpu.memory_space<smem>>
      %276 = arith.index_cast %275 : i32 to index
      %c0_198 = arith.constant 0 : index
      %277 = vector.load %arg14[%276, %c0_198] : memref<16x128xf32, #tpu.memory_space<vmem>>, vector<1x128xf32>
      %c0_199 = arith.constant 0 : index
      %c5_200 = arith.constant 5 : index
      %c0_201 = arith.constant 0 : index
      %278 = vector.load %arg12[%c0_199, %c5_200, %c0_201] : memref<1x8x128xf32, #tpu.memory_space<vmem>>, vector<1x1x128xf32>
      %279 = vector.shape_cast %278 : vector<1x1x128xf32> to vector<1x128xf32>
      %280 = vector.shape_cast %277 : vector<1x128xf32> to vector<1x1x128xf32>
      tpu.vector_store %arg12[%c0_199, %c5_200, %c0_201], %280 {strides = array<i32>} : memref<1x8x128xf32, #tpu.memory_space<vmem>>, vector<1x1x128xf32>,
      %281 = arith.index_cast %275 : i32 to index
      %c0_202 = arith.constant 0 : index
      %282 = vector.load %arg15[%281, %c0_202] : memref<16x128xf32, #tpu.memory_space<vmem>>, vector<1x128xf32>
      %c0_203 = arith.constant 0 : index
      %c5_204 = arith.constant 5 : index
      %c0_205 = arith.constant 0 : index
      %283 = vector.load %arg13[%c0_203, %c5_204, %c0_205] : memref<1x8x128xf32, #tpu.memory_space<vmem>>, vector<1x1x128xf32>
      %284 = vector.shape_cast %283 : vector<1x1x128xf32> to vector<1x128xf32>
      %285 = vector.shape_cast %282 : vector<1x128xf32> to vector<1x1x128xf32>
      tpu.vector_store %arg13[%c0_203, %c5_204, %c0_205], %285 {strides = array<i32>} : memref<1x8x128xf32, #tpu.memory_space<vmem>>, vector<1x1x128xf32>,
      %c6_206 = arith.constant 6 : index
      %286 = memref.load %arg4[%c6_206] : memref<8xi32, #tpu.memory_space<smem>>
      %287 = arith.index_cast %286 : i32 to index
      %c0_207 = arith.constant 0 : index
      %288 = vector.load %arg14[%287, %c0_207] : memref<16x128xf32, #tpu.memory_space<vmem>>, vector<1x128xf32>
      %c0_208 = arith.constant 0 : index
      %c6_209 = arith.constant 6 : index
      %c0_210 = arith.constant 0 : index
      %289 = vector.load %arg12[%c0_208, %c6_209, %c0_210] : memref<1x8x128xf32, #tpu.memory_space<vmem>>, vector<1x1x128xf32>
      %290 = vector.shape_cast %289 : vector<1x1x128xf32> to vector<1x128xf32>
      %291 = vector.shape_cast %288 : vector<1x128xf32> to vector<1x1x128xf32>
      tpu.vector_store %arg12[%c0_208, %c6_209, %c0_210], %291 {strides = array<i32>} : memref<1x8x128xf32, #tpu.memory_space<vmem>>, vector<1x1x128xf32>,
      %292 = arith.index_cast %286 : i32 to index
      %c0_211 = arith.constant 0 : index
      %293 = vector.load %arg15[%292, %c0_211] : memref<16x128xf32, #tpu.memory_space<vmem>>, vector<1x128xf32>
      %c0_212 = arith.constant 0 : index
      %c6_213 = arith.constant 6 : index
      %c0_214 = arith.constant 0 : index
      %294 = vector.load %arg13[%c0_212, %c6_213, %c0_214] : memref<1x8x128xf32, #tpu.memory_space<vmem>>, vector<1x1x128xf32>
      %295 = vector.shape_cast %294 : vector<1x1x128xf32> to vector<1x128xf32>
      %296 = vector.shape_cast %293 : vector<1x128xf32> to vector<1x1x128xf32>
      tpu.vector_store %arg13[%c0_212, %c6_213, %c0_214], %296 {strides = array<i32>} : memref<1x8x128xf32, #tpu.memory_space<vmem>>, vector<1x1x128xf32>,
      %c7_215 = arith.constant 7 : index
      %297 = memref.load %arg4[%c7_215] : memref<8xi32, #tpu.memory_space<smem>>
      %298 = arith.index_cast %297 : i32 to index
      %c0_216 = arith.constant 0 : index
      %299 = vector.load %arg14[%298, %c0_216] : memref<16x128xf32, #tpu.memory_space<vmem>>, vector<1x128xf32>
      %c0_217 = arith.constant 0 : index
      %c7_218 = arith.constant 7 : index
      %c0_219 = arith.constant 0 : index
      %300 = vector.load %arg12[%c0_217, %c7_218, %c0_219] : memref<1x8x128xf32, #tpu.memory_space<vmem>>, vector<1x1x128xf32>
      %301 = vector.shape_cast %300 : vector<1x1x128xf32> to vector<1x128xf32>
      %302 = vector.shape_cast %299 : vector<1x128xf32> to vector<1x1x128xf32>
      tpu.vector_store %arg12[%c0_217, %c7_218, %c0_219], %302 {strides = array<i32>} : memref<1x8x128xf32, #tpu.memory_space<vmem>>, vector<1x1x128xf32>,
      %303 = arith.index_cast %297 : i32 to index
      %c0_220 = arith.constant 0 : index
      %304 = vector.load %arg15[%303, %c0_220] : memref<16x128xf32, #tpu.memory_space<vmem>>, vector<1x128xf32>
      %c0_221 = arith.constant 0 : index
      %c7_222 = arith.constant 7 : index
      %c0_223 = arith.constant 0 : index
      %305 = vector.load %arg13[%c0_221, %c7_222, %c0_223] : memref<1x8x128xf32, #tpu.memory_space<vmem>>, vector<1x1x128xf32>
      %306 = vector.shape_cast %305 : vector<1x1x128xf32> to vector<1x128xf32>
      %307 = vector.shape_cast %304 : vector<1x128xf32> to vector<1x1x128xf32>
      tpu.vector_store %arg13[%c0_221, %c7_222, %c0_223], %307 {strides = array<i32>} : memref<1x8x128xf32, #tpu.memory_space<vmem>>, vector<1x1x128xf32>,
    } else {
    }
    return
  }
  func.func @transform_0(%arg0: i32, %arg1: i32, %arg2: memref<24xi32, #tpu.memory_space<smem>>, %arg3: memref<24xi32, #tpu.memory_space<smem>>, %arg4: memref<8xi32, #tpu.memory_space<smem>>) -> (i32, i32, i32) {
    %c0_i32 = arith.constant 0 : i32
    %c0_i32_0 = arith.constant 0 : i32
    %c0_i32_1 = arith.constant 0 : i32
    return %arg1, %c0_i32, %c0_i32_0 : i32, i32, i32
  }
  func.func @transform_1(%arg0: i32, %arg1: i32, %arg2: memref<24xi32, #tpu.memory_space<smem>>, %arg3: memref<24xi32, #tpu.memory_space<smem>>, %arg4: memref<8xi32, #tpu.memory_space<smem>>) -> (i32, i32, i32) {
    %c0_i32 = arith.constant 0 : i32
    %c0_i32_0 = arith.constant 0 : i32
    %c0_i32_1 = arith.constant 0 : i32
    return %arg1, %c0_i32, %c0_i32_0 : i32, i32, i32
  }
  func.func @transform_2(%arg0: i32, %arg1: i32, %arg2: memref<24xi32, #tpu.memory_space<smem>>, %arg3: memref<24xi32, #tpu.memory_space<smem>>, %arg4: memref<8xi32, #tpu.memory_space<smem>>) -> (i32, i32, i32) {
    %c0_i32 = arith.constant 0 : i32
    %c0_i32_0 = arith.constant 0 : i32
    %c0_i32_1 = arith.constant 0 : i32
    return %arg1, %c0_i32, %c0_i32_0 : i32, i32, i32
  }
  func.func @transform_3(%arg0: i32, %arg1: i32, %arg2: memref<24xi32, #tpu.memory_space<smem>>, %arg3: memref<24xi32, #tpu.memory_space<smem>>, %arg4: memref<8xi32, #tpu.memory_space<smem>>) -> (i32, i32, i32) {
    %c0_i32 = arith.constant 0 : i32
    %c0_i32_0 = arith.constant 0 : i32
    %c0_i32_1 = arith.constant 0 : i32
    return %arg0, %c0_i32, %c0_i32_0 : i32, i32, i32
  }
  func.func @transform_4(%arg0: i32, %arg1: i32, %arg2: memref<24xi32, #tpu.memory_space<smem>>, %arg3: memref<24xi32, #tpu.memory_space<smem>>, %arg4: memref<8xi32, #tpu.memory_space<smem>>) -> (i32, i32, i32) {
    %c0_i32 = arith.constant 0 : i32
    %c0_i32_0 = arith.constant 0 : i32
    %c0_i32_1 = arith.constant 0 : i32
    return %arg0, %c0_i32, %c0_i32_0 : i32, i32, i32
  }
  func.func @transform_5(%arg0: i32, %arg1: i32, %arg2: memref<24xi32, #tpu.memory_space<smem>>, %arg3: memref<24xi32, #tpu.memory_space<smem>>, %arg4: memref<8xi32, #tpu.memory_space<smem>>) -> (i32, i32, i32) {
    %c0_i32 = arith.constant 0 : i32
    %c0_i32_0 = arith.constant 0 : i32
    %c0_i32_1 = arith.constant 0 : i32
    return %arg0, %c0_i32, %c0_i32_0 : i32, i32, i32
  }
  func.func @transform_6(%arg0: i32, %arg1: i32, %arg2: memref<24xi32, #tpu.memory_space<smem>>, %arg3: memref<24xi32, #tpu.memory_space<smem>>, %arg4: memref<8xi32, #tpu.memory_space<smem>>) -> (i32, i32, i32) {
    %c0_i32 = arith.constant 0 : i32
    %c0_i32_0 = arith.constant 0 : i32
    %c0_i32_1 = arith.constant 0 : i32
    return %arg0, %c0_i32, %c0_i32_0 : i32, i32, i32
  }
  func.func @transform_7(%arg0: i32, %arg1: i32, %arg2: memref<24xi32, #tpu.memory_space<smem>>, %arg3: memref<24xi32, #tpu.memory_space<smem>>, %arg4: memref<8xi32, #tpu.memory_space<smem>>) -> (i32, i32, i32) {
    %c0_i32 = arith.constant 0 : i32
    %c0_i32_0 = arith.constant 0 : i32
    %c0_i32_1 = arith.constant 0 : i32
    return %arg0, %c0_i32, %c0_i32_0 : i32, i32, i32
  }
  func.func @transform_8(%arg0: i32, %arg1: i32, %arg2: memref<24xi32, #tpu.memory_space<smem>>, %arg3: memref<24xi32, #tpu.memory_space<smem>>, %arg4: memref<8xi32, #tpu.memory_space<smem>>) -> (i32, i32, i32) {
    %c0_i32 = arith.constant 0 : i32
    %c0_i32_0 = arith.constant 0 : i32
    %c0_i32_1 = arith.constant 0 : i32
    return %arg0, %c0_i32, %c0_i32_0 : i32, i32, i32
  }
}

</mosaic_0001>

<bundles_post_ra>
// kernel: _device_forward_impl.1
= control target key start
LH: loop header
LB: loop body
LE: loop exit
PB: predicated region body
PF: predicated region fallthrough
CT: control target
= control target key end

     0   :  { %s1595_s23 = smov [#allocation9]   ;;  %s1596_s24 = smov [#allocation10]   ;;  %s2078_s0 = inlined_call_operand.vmem [shape: s32[24], index: 0, kind: input, shape index: {}]   ;;  %s2079_s3 = inlined_call_operand.vmem [shape: f32[3,8,16], index: 3, kind: input, shape index: {}]   ;;  %s2080_s4 = inlined_call_operand.vmem [shape: f32[3,8,8], index: 4, kind: input, shape index: {}]   ;;  %s2081_s5 = inlined_call_operand.vmem [shape: f32[3,8,8], index: 5, kind: input, shape index: {}]   ;;  %s2082_s6 = inlined_call_operand.vmem [shape: f32[2,16,512], index: 6, kind: input, shape index: {}]   ;;  %s2083_s7 = inlined_call_operand.vmem [shape: f32[2,1,512], index: 7, kind: input, shape index: {}]   ;;  %s2084_s8 = inlined_call_operand.vmem [shape: f32[2,128,384], index: 8, kind: input, shape index: {}]   ;;  %s2085_s9 = inlined_call_operand.vmem [shape: f32[2,128,128], index: 9, kind: input, shape index: {}]   ;;  %s2086_s10 = inlined_call_operand.hbm [shape: f32[2,8,128], index: 10, kind: output, shape index: {0}]   ;;  %s2087_s11 = inlined_call_operand.hbm [shape: f32[2,8,128], index: 11, kind: output, shape index: {1}]   ;;  %s2088_s1 = inlined_call_operand.vmem [shape: s32[24], index: 1, kind: input, shape index: {}]   ;;  %s2089_s2 = inlined_call_operand.vmem [shape: s32[8], index: 2, kind: input, shape index: {}]  }
   0x1   :  { %2105 = sst [smem:[#allocation29_spill]] %s2079_s3  ;;  %s18_s19 = sshll.u32 %s2078_s0, 4  ;;  %s19_s19 = int_to_ptr.vmem [resolvable:$true] %s18_s19 }
   0x2   :  { %2106 = sst [smem:[#allocation30_spill]] %s2087_s11  ;;  %s23_s22 = sshll.u32 %s2088_s1, 4  ;;  %s24_s22 = int_to_ptr.vmem [resolvable:$true] %s23_s22 }
   0x3   :  { %21 = dma.vmem_to_smem %s19_s19, 16, %s1595_s23, [#allocation8] }
   0x4   :  { %26 = dma.vmem_to_smem %s24_s22, 16, %s1596_s24, [#allocation8] }
   0x5   :  { %s28_s27 = sshll.u32 %s2089_s2, 4  ;;  %s1597_s28 = smov [#allocation11]   ;;  %s29_s27 = int_to_ptr.vmem [resolvable:$true] %s28_s27 }
   0x6   :  { %31 = dma.vmem_to_smem %s29_s27, 16, %s1597_s28, [#allocation8] }
   0x7   :  { %1553 = dma.done.wait [#allocation8], 48 }
   0x8   :  { %1554 = vsyncadd [#allocation8], 4294967248 }
   0x9   :  { %34 = sfence }
   0xa   :  { %35 = vsyncpa [#allocation13], 0 }
   0xb   :  { %37 = vsyncpa [#allocation13 + $0x1], 0 }
   0xc   :  { %38 = vsyncpa [#allocation15], 0 }
   0xd   :  { %40 = vsyncpa [#allocation15 + $0x1], 0  ;;  %s1668_s0 = smov 0   ;;  %s1670_s1 = smov 0  }
   0xe   :  { %s1672_s29 = smov 0   ;;  %s1674_s30 = smov 0  }
   0xf   :  { %s1676_s12 = smov 0   ;;  %s1678_s2 = smov 0  }
  0x10   :  { %s1680_s13 = smov 0   ;;  %s1682_s14 = smov 0  }
  0x11 LB: > { %2107 = sst [smem:[#allocation19_spill]] %s1565_s0  ;;  %s1288_s15 = sadd.s32 4294967295, %s1593_s14   ;;  %s1593_s14 = sphi %s1682_s14, %s46_s14   ;;  %s1589_s13 = sphi %s1680_s13, %s2137_s13   ;;  %s1585_s2 = sphi %s1678_s2, %s2136_s2   ;;  %s1581_s12 = sphi %s1676_s12, %s2135_s12   ;;  %s1577_s30 = sphi %s1674_s30, %s2134_s30   ;;  %s1573_s29 = sphi %s1672_s29, %s2133_s29   ;;  %s1569_s1 = sphi %s1670_s1, %s2132_s1   ;;  %s1565_s0 = sphi %s1668_s0, %s2131_s0  }
  0x12   : > { %2108 = sst [smem:[#allocation20_spill]] %s1569_s1  ;;  %s1289_s16 = sadd.s32 4294967294, %s1593_s14  }
  0x13   : > { %2109 = sst [smem:[#allocation21_spill]] %s1573_s29  ;;  %s55_s17 = sadd.s32 1, %s1585_s2 }
  0x14   : > { %2110 = sst [smem:[#allocation22_spill]] %s1585_s2  ;;  %p56_p0 = scmp.ge.s32.totalorder %s55_s17, 3 }
  0x15   : > { %2111 = sst [smem:[#allocation23_spill]] %s1589_s13  ;;  %s58_s18 = sadd.s32 1, %s1589_s13 }
  0x16   : > { %2112 = sst [smem:[#allocation24_spill]] %s1593_s14  ;;  %p257_p1 = scmp.ne.s32.totalorder %s1573_s29, %s1569_s1 }
  0x17   : > { %p258_p2 = scmp.eq.s32.totalorder %s1288_s15, 5  ;;  %s2139_s17 = smov (%p56_p0, %s55_s17), 0 }
  0x18   : > { %2113 = sst [smem:[#allocation25_spill]] %s2139_s17  ;;  %s2141_s18 = smov (!%p56_p0, %s58_s18), %s1589_s13 }
  0x19   : > { %p1717_p3 = por %p258_p2, %p257_p1  ;;  %p263_p4 = scmp.ne.s32.totalorder %s1569_s1, %s1565_s0 }
  0x1a   : > { %p60_p5 = scmp.ge.s32.totalorder %s2141_s18, 2  ;;  %p264_p6 = scmp.eq.s32.totalorder %s1289_s16, 5 }
  0x1b   : > { %p1292_p7 = scmp.ge.s32.totalorder %s1593_s14, 1  ;;  %p360_p8 = scmp.lt.s32.totalorder %s1593_s14, 7 }
  0x1c   : > { %s2143_s18 = smov (%p60_p5, %s2141_s18), 0  ;;  %p1727_p9 = por %p264_p6, %p263_p4 }
  0x1d   : > { %2115 = sst [smem:[#allocation26_spill]] %s2143_s18  ;;  %p361_p10 = pnand %p1292_p7, %p360_p8 }
  0x1e   : > { %s2116_s20 = scalar_select %p1727_p9, 1, 0 }
  0x1f   : > { %s244_s21 = ssub.s32 %s1589_s13, %s2143_s18  ;;  %s247_s22 = sadd.s32 1, %s1573_s29 }
  0x20   : > { %2117 = sst [smem:[#allocation27_spill]] %s2116_s20  ;;  %p245_p11 = scmp.eq.s32.totalorder %s244_s21, 0 }
  0x21   : > { %364 = sbr.rel (%p361_p10) target bundleno = 592 (0x250), region = 48  ;;  %s1738_s24 = sand.u32 (!%p361_p10), 1, %s1569_s1  }
  0x22   : > { %s1735_s23 = scalar_select %p245_p11, %s1573_s29, %s247_s22  }
  0x23   : > { %p425_p12 = scmp.lt.s32.totalorder (!%p361_p10), %s1577_s30, 2  ;;  %s1293_s25 = sshll.u32 (!%p361_p10), %s1738_s24, 3 }
  0x24   : > { %2118 = sst [smem:[#allocation28_spill]] %s1735_s23  ;;  %p437_p13 = scmp.lt.s32.totalorder (!%p361_p10), %s1581_s12, 1 }
  0x25   : > { %s2119_s3 = sld [smem:[#allocation29_spill]] (!%p361_p10)  ;;  %s1779_s1 = scalar_lea.vmem (!%p361_p10), [#allocation12], %s1293_s25 }
  0x26   : > { %s426_s26 = scalar_select %p425_p12, %s1577_s30, 2 }
  0x27   : > { %s438_s27 = scalar_select %p437_p13, %s1581_s12, 1 }
  0x28   : > { %s1745_s28 = sshll.u32 %s426_s26, 3  ;;  %p1304_p0 = scmp.ne.s32.totalorder %s1577_s30, 0 }
  0x29   : > { %s1330_s29 = sshll.u32 %s438_s27, 6  ;;  %s1300_s0 = sshll.u32 %s438_s27, 2 }
  0x2a   : > { %s1762_s26 = scalar_lea.vmem %s2082_s6, %s1330_s29  ;;  %s1767_s16 = scalar_lea.vmem %s2083_s7, %s1300_s0 }
  0x2b   : > { %s428_s21 = scalar_lea.vmem %s2119_s3, %s1745_s28  ;;  %s1332_s3 = smul.u32 384, %s438_s27 }
  0x2c   : > { %s1331_s11 = sshll.u32 %s438_s27, 7  ;;  %s1781_s29 = scalar_lea.vmem [#allocation14], %s1293_s25 }
  0x2d   : > { %s1772_s17 = scalar_lea.vmem %s2084_s8, %s1332_s3  ;;  %s1777_s23 = scalar_lea.vmem %s2085_s9, %s1331_s11 }
  0x2e   : > { %459 = sbr.rel (%p1304_p0) target bundleno = 56 (0x38), region = 52 }
  0x33   : > { %v1598_v0 = vmov 0.0  }
  0x34   : > { %460 = vst [vmem:[#allocation2] sm:$0xff] %v1598_v0 }
  0x35   : > { %461 = vst [vmem:[#allocation2 + $0x8] sm:$0xff] %v1598_v0 }
  0x36   : > { %462 = vst [vmem:[#allocation3] sm:$0xff] %v1598_v0 }
  0x37   : > { %463 = vst [vmem:[#allocation3 + $0x8] sm:$0xff] %v1598_v0 }
  0x38 PF: > { %v537_v1 = vld [vmem:[%s1762_s26 + $0x20] sm:$0xff]  ;;  %s1787_s3 = sshll.u32 %s1577_s30, 3  ;;  %vm551_vm0 = vcmask 130048   ;;  %v540_v4 = vld [vmem:[%s1762_s26 + $0x38] sm:$0xff]  ;;  %v538_v6 = vld [vmem:[%s1762_s26 + $0x28] sm:$0xff]  ;;  %vm635_vm1 = vcmask 64512  }
  0x39   : > { %v533_v2 = vld [vmem:[%s1762_s26] sm:$0xff]  ;;  %569 = vmatpush.msra.mxu0 %v537_v1  ;;  %v536_v5 = vld [vmem:[%s1762_s26 + $0x18] sm:$0xff]  ;;  %s1794_s11 = sld [smem:[#allocation10 + %s1787_s3]]  ;;  %s472_s0 = sadd.s32 1, %s1787_s3  ;;  %629 = vmatpush.msra.mxu3 %v540_v4  ;;  %v539_v7 = vld [vmem:[%s1762_s26 + $0x30] sm:$0xff] }
  0x3a   : > { %v1789_v3 = vld [vmem:[%s428_s21] sm:$0xff]  ;;  %s1799_s14 = sld [smem:[#allocation10 + %s472_s0]]  ;;  %s2104_s20 = sadd.s32 2, %s1787_s3  ;;  %589 = vmatpush.msra.mxu1 %v538_v6  ;;  %v534_v8 = vld [vmem:[%s1762_s26 + $0x8] sm:$0xff]  ;;  %v535_v9 = vld [vmem:[%s1762_s26 + $0x10] sm:$0xff]  ;;  %609 = vmatpush.msra.mxu2 %v539_v7 }
  0x3b   : > { %570 = vmatpush.msra.mxu0 %v533_v2  ;;  %s1806_s25 = sld [smem:[#allocation10 + %s2104_s20]]  ;;  %s2103_s27 = sadd.s32 3, %s1787_s3  ;;  %630 = vmatpush.msra.mxu3 %v536_v5  ;;  %v704_v10 = vld [vmem:[%s1772_s17 + $0x168] sm:$0xff]  ;;  %v706_v11 = vld [vmem:[%s1772_s17 + $0x178] sm:$0xff]  ;;  %v705_v12 = vld [vmem:[%s1772_s17 + $0x170] sm:$0xff] }
  0x3c   : > { %1306 = vmatmul.msk.f32.vlgmr.msra.gmra.mxu0 %vm551_vm0, %v1789_v3  ;;  %s1814_s21 = sld [smem:[#allocation10 + %s2103_s27]]  ;;  %s2101_s15 = sadd.s32 4, %s1787_s3  ;;  %1309 = vmatmul.msk.f32.vlgmr.msra.gmra.mxu3 %vm551_vm0, %v1789_v3  ;;  %v703_v13 = vld [vmem:[%s1772_s17 + $0x160] sm:$0xff]  ;;  %v701_v14 = vld [vmem:[%s1772_s17 + $0x150] sm:$0xff]  ;;  %v702_v15 = vld [vmem:[%s1772_s17 + $0x158] sm:$0xff] }
  0x3d   : > { %s1824_s18 = sld [smem:[#allocation10 + %s2101_s15]]  ;;  %s2100_s22 = sadd.s32 5, %s1787_s3  ;;  %590 = vmatpush.msra.mxu1 %v534_v8  ;;  %747 = vmatpush.msrb.mxu3 %v706_v11  ;;  %v698_v16 = vld [vmem:[%s1772_s17 + $0x138] sm:$0xff]  ;;  %v699_v17 = vld [vmem:[%s1772_s17 + $0x140] sm:$0xff]  ;;  %v700_v18 = vld [vmem:[%s1772_s17 + $0x148] sm:$0xff] }
  0x3e   : > { %s1831_s2 = sld [smem:[#allocation10 + %s2100_s22]]  ;;  %s2102_s26 = sadd.s32 6, %s1787_s3  ;;  %610 = vmatpush.msra.mxu2 %v535_v9  ;;  %v695_v20 = vld [vmem:[%s1772_s17 + $0x120] sm:$0xff]  ;;  %v697_v21 = vld [vmem:[%s1772_s17 + $0x130] sm:$0xff]  ;;  %v696_v24 = vld [vmem:[%s1772_s17 + $0x128] sm:$0xff]  ;;  %1307 = vmatmul.msk.f32.vlgmr.msra.gmra.mxu1 %vm551_vm0, %v1789_v3 }
  0x3f   : > { %s1838_s13 = sld [smem:[#allocation10 + %s2102_s26]]  ;;  %707 = vmatpush.msrb.mxu1 %v704_v10  ;;  %s466_s22 = scalar_lea.vmem [#allocation2], %s1794_s11  ;;  %748 = vmatpush.msrb.mxu3 %v703_v13  ;;  %v694_v26 = vld [vmem:[%s1772_s17 + $0x118] sm:$0xff]  ;;  %v692_v28 = vld [vmem:[%s1772_s17 + $0x108] sm:$0xff]  ;;  %v693_v30 = vld [vmem:[%s1772_s17 + $0x110] sm:$0xff] }
  0x40   : > { %v467_v19 = vld [vmem:[%s466_s22] sm:$0x1]  ;;  %s520_s15 = sadd.s32 7, %s1787_s3  ;;  %727 = vmatpush.msrb.mxu2 %v705_v12  ;;  %s474_s26 = scalar_lea.vmem [#allocation2], %s1799_s14  ;;  %v689_v32 = vld [vmem:[%s1772_s17 + $0xf0] sm:$0xff]  ;;  %v690_v33 = vld [vmem:[%s1772_s17 + $0xf8] sm:$0xff] }
  0x41   : > { %468 = vst [vmem:[#allocation4] sm:$0x1] %v467_v19  ;;  %v475_v22 = vld [vmem:[%s474_s26] sm:$0x1]  ;;  %s1850_s27 = sld [smem:[#allocation10 + %s520_s15]]  ;;  %708 = vmatpush.msrb.mxu1 %v701_v14  ;;  %1308 = vmatmul.msk.f32.vlgmr.msra.gmra.mxu2 %vm551_vm0, %v1789_v3  ;;  %s482_s22 = scalar_lea.vmem [#allocation2], %s1806_s25 }
  0x42   : > { %476 = vst [vmem:[#allocation4 + $0x1] sm:$0x1] %v475_v22  ;;  %v483_v23 = vld [vmem:[%s482_s22] sm:$0x1]  ;;  %728 = vmatpush.msrb.mxu2 %v702_v15  ;;  %749 = vmatpush.msrb.mxu3 %v700_v18  ;;  %s490_s20 = scalar_lea.vmem [#allocation2], %s1814_s21  ;;  %v686_v36 = vld [vmem:[%s1772_s17 + $0xd8] sm:$0xff] }
  0x43   : > { %484 = vst [vmem:[#allocation4 + $0x2] sm:$0x1] %v483_v23  ;;  %v491_v25 = vld [vmem:[%s490_s20] sm:$0x1]  ;;  %709 = vmatpush.msrb.mxu1 %v698_v16  ;;  %s498_s26 = scalar_lea.vmem [#allocation2], %s1824_s18  ;;  %v688_v38 = vld [vmem:[%s1772_s17 + $0xe8] sm:$0xff] }
  0x44   : > { %492 = vst [vmem:[#allocation4 + $0x3] sm:$0x1] %v491_v25  ;;  %v499_v27 = vld [vmem:[%s498_s26] sm:$0x1]  ;;  %729 = vmatpush.msrb.mxu2 %v699_v17  ;;  %750 = vmatpush.msrb.mxu3 %v697_v21  ;;  %s506_s22 = scalar_lea.vmem [#allocation2], %s1831_s2  ;;  %v684_v40 = vld [vmem:[%s1772_s17 + $0xc8] sm:$0xff] }
  0x45   : > { %500 = vst [vmem:[#allocation4 + $0x4] sm:$0x1] %v499_v27  ;;  %v507_v29 = vld [vmem:[%s506_s22] sm:$0x1]  ;;  %710 = vmatpush.msrb.mxu1 %v695_v20  ;;  %s514_s20 = scalar_lea.vmem [#allocation2], %s1838_s13  ;;  %v685_v41 = vld [vmem:[%s1772_s17 + $0xd0] sm:$0xff]  ;;  %s2121_s22 = scalar_lea.vmem %s2081_s5, %s1745_s28 }
  0x46   : > { %508 = vst [vmem:[#allocation4 + $0x5] sm:$0x1] %v507_v29  ;;  %v515_v31 = vld [vmem:[%s514_s20] sm:$0x1]  ;;  %730 = vmatpush.msrb.mxu2 %v696_v24  ;;  %751 = vmatpush.msrb.mxu3 %v694_v26  ;;  %v680_v42 = vld [vmem:[%s1772_s17 + $0xa8] sm:$0xff]  ;;  %v682_v43 = vld [vmem:[%s1772_s17 + $0xb8] sm:$0xff] }
  0x47   : > { %516 = vst [vmem:[#allocation4 + $0x6] sm:$0x1] %v515_v31  ;;  %711 = vmatpush.msrb.mxu1 %v692_v28  ;;  %v691_v34 = vld [vmem:[%s1772_s17 + $0x100] sm:$0xff]  ;;  %s522_s26 = scalar_lea.vmem [#allocation2], %s1850_s27  ;;  %v681_v44 = vld [vmem:[%s1772_s17 + $0xb0] sm:$0xff]  ;;  %v678_v48 = vld [vmem:[%s1772_s17 + $0x98] sm:$0xff] }
  0x48   : > { %v523_v35 = vld [vmem:[%s522_s26] sm:$0x1]  ;;  %731 = vmatpush.msrb.mxu2 %v693_v30  ;;  %752 = vmatpush.msrb.mxu3 %v691_v34  ;;  %v677_v46 = vld [vmem:[%s1772_s17 + $0x90] sm:$0xff]  ;;  %s2120_s26 = scalar_lea.vmem %s2080_s4, %s1745_s28  ;;  %v824_v50 = vld [vmem:[%s1777_s23 + $0x78] sm:$0xff]  ;;  %s477_s20 = scalar_lea.vmem [#allocation3], %s1799_s14 }
  0x49   : > { %524 = vst [vmem:[#allocation4 + $0x7] sm:$0x1] %v523_v35  ;;  %712 = vmatpush.msrb.mxu1 %v689_v32  ;;  %v687_v37 = vld [vmem:[%s1772_s17 + $0xe0] sm:$0xff]  ;;  %v674_v51 = vld [vmem:[%s1772_s17 + $0x78] sm:$0xff]  ;;  %v676_v53 = vld [vmem:[%s1772_s17 + $0x88] sm:$0xff]  ;;  %s493_s28 = scalar_lea.vmem [#allocation3], %s1814_s21 }
  0x4a   : > { %732 = vmatpush.msrb.mxu2 %v690_v33  ;;  %753 = vmatpush.msrb.mxu3 %v688_v38  ;;  %v683_v39 = vld [vmem:[%s1772_s17 + $0xc0] sm:$0xff]  ;;  %v823_v54 = vld [vmem:[%s1777_s23 + $0x70] sm:$0xff]  ;;  %v822_v55 = vld [vmem:[%s1777_s23 + $0x68] sm:$0xff]  ;;  %s525_s14 = scalar_lea.vmem [#allocation3], %s1850_s27  ;;  %s1956_s27 = sld [smem:[#allocation9 + %s472_s0]] }
  0x4b   : > { %713 = vmatpush.msrb.mxu1 %v686_v36  ;;  %v679_v45 = vld [vmem:[%s1772_s17 + $0xa0] sm:$0xff]  ;;  %v820_v57 = vld [vmem:[%s1777_s23 + $0x58] sm:$0xff]  ;;  %v819_v58 = vld [vmem:[%s1777_s23 + $0x50] sm:$0xff]  ;;  %s2122_s21 = sadd.s32 2, %s1787_s3  ;;  %s2125_s0 = sadd.s32 5, %s1787_s3 }
  0x4c   : > { %733 = vmatpush.msrb.mxu2 %v687_v37  ;;  %754 = vmatpush.msrb.mxu3 %v685_v41  ;;  %v1883_v47 = vld [vmem:[%s2120_s26] sm:$0xff]  ;;  %v818_v59 = vld [vmem:[%s1777_s23 + $0x48] sm:$0xff]  ;;  %v673_v62 = vld [vmem:[%s1772_s17 + $0x70] sm:$0xff]  ;;  %s485_s26 = scalar_lea.vmem [#allocation3], %s1806_s25  ;;  %s1952_s25 = sld [smem:[#allocation9 + %s1787_s3]] }
  0x4d   : > { %714 = vmatpush.msrb.mxu1 %v683_v39  ;;  %v675_v52 = vld [vmem:[%s1772_s17 + $0x80] sm:$0xff]  ;;  %v672_v61 = vld [vmem:[%s1772_s17 + $0x68] sm:$0xff]  ;;  %v669_v1 = vld [vmem:[%s1772_s17 + $0x50] sm:$0xff]  ;;  %p1316_p1 = scmp.ne.s32.totalorder %s1577_s30, 2 }
  0x4e   : > { %734 = vmatpush.msrb.mxu2 %v684_v40  ;;  %755 = vmatpush.msrb.mxu3 %v682_v43  ;;  %v821_v56 = vld [vmem:[%s1777_s23 + $0x60] sm:$0xff]  ;;  %v668_v0 = vld [vmem:[%s1772_s17 + $0x48] sm:$0xff]  ;;  %v670_v2 = vld [vmem:[%s1772_s17 + $0x58] sm:$0xff] }
  0x4f   : > { %715 = vmatpush.msrb.mxu1 %v680_v42  ;;  %v671_v60 = vld [vmem:[%s1772_s17 + $0x60] sm:$0xff]  ;;  %v816_v3 = vld [vmem:[%s1777_s23 + $0x38] sm:$0xff]  ;;  %v665_v4 = vld [vmem:[%s1772_s17 + $0x30] sm:$0xff] }
  0x50   : > { %v1886_v49 = vld [vmem:[#allocation4] sm:$0xff]  ;;  %735 = vmatpush.msrb.mxu2 %v681_v44  ;;  %756 = vmatpush.msrb.mxu3 %v679_v45  ;;  %v666_v5 = vld [vmem:[%s1772_s17 + $0x38] sm:$0xff]  ;;  %v815_v7 = vld [vmem:[%s1777_s23 + $0x30] sm:$0xff] }
  0x51   : > { %654 = vmatpush.msrb.mxu0 %v1886_v49  ;;  %716 = vmatpush.msrb.mxu1 %v677_v46  ;;  %v817_v63 = vld [vmem:[%s1777_s23 + $0x40] sm:$0xff]  ;;  %v662_v8 = vld [vmem:[%s1772_s17 + $0x18] sm:$0xff]  ;;  %v664_v10 = vld [vmem:[%s1772_s17 + $0x28] sm:$0xff] }
  0x52   : > { %1310 = vmatmul.msk.f32.vlgmr.msrb.gmra.mxu0 %vm635_vm1, %v1883_v47  ;;  %736 = vmatpush.msrb.mxu2 %v678_v48  ;;  %v667_v6 = vld [vmem:[%s1772_s17 + $0x40] sm:$0xff]  ;;  %v814_v11 = vld [vmem:[%s1777_s23 + $0x28] sm:$0xff]  ;;  %v661_v14 = vld [vmem:[%s1772_s17 + $0x10] sm:$0xff] }
  0x53   : > { %825 = vmatpush.msra.mxu0 %v824_v50  ;;  %717 = vmatpush.msrb.mxu1 %v674_v51  ;;  %v663_v9 = vld [vmem:[%s1772_s17 + $0x20] sm:$0xff]  ;;  %v660_v13 = vld [vmem:[%s1772_s17 + $0x8] sm:$0xff]  ;;  %v812_v16 = vld [vmem:[%s1777_s23 + $0x18] sm:$0xff] }
  0x54   : > { %737 = vmatpush.msrb.mxu2 %v675_v52  ;;  %757 = vmatpush.msrb.mxu3 %v676_v53  ;;  %v659_v12 = vld [vmem:[%s1772_s17] sm:$0xff]  ;;  %v811_v17 = vld [vmem:[%s1777_s23 + $0x10] sm:$0xff]  ;;  %v810_v18 = vld [vmem:[%s1777_s23 + $0x8] sm:$0xff]  ;;  %s501_s17 = scalar_lea.vmem [#allocation3], %s1824_s18  ;;  %s1960_s18 = sld [smem:[#allocation9 + %s2122_s21]] }
  0x55   : > { %826 = vmatpush.msra.mxu0 %v823_v54  ;;  %718 = vmatpush.msrb.mxu1 %v671_v60  ;;  %v813_v15 = vld [vmem:[%s1777_s23 + $0x20] sm:$0xff] }
  0x56   : > { %738 = vmatpush.msrb.mxu2 %v672_v61  ;;  %758 = vmatpush.msrb.mxu3 %v673_v62  ;;  %v809_v19 = vld [vmem:[%s1777_s23] sm:$0xff]  ;;  %s509_s23 = scalar_lea.vmem [#allocation3], %s1831_s2  ;;  %s2123_s2 = sadd.s32 3, %s1787_s3 }
  0x57   : > { %827 = vmatpush.msra.mxu0 %v822_v55  ;;  %719 = vmatpush.msrb.mxu1 %v668_v0  ;;  %v1929_v20 = vld [vmem:[%s1767_s16] sm:$0xf]  ;;  %s469_s16 = scalar_lea.vmem [#allocation3], %s1794_s11  ;;  %s517_s11 = scalar_lea.vmem [#allocation3], %s1838_s13 }
  0x58   : > { %739 = vmatpush.msrb.mxu2 %v669_v1  ;;  %759 = vmatpush.msrb.mxu3 %v670_v2  ;;  %v546_v21 = vperm.slane %v1929_v20, 3  ;;  %v530_v26 = vld [vmem:[%s2121_s22] sm:$0xff]  ;;  %v543_v28 = vperm.slane %v1929_v20, 0  ;;  %v544_v61 = vperm.slane %v1929_v20, 1  ;;  %s1964_s13 = sld [smem:[#allocation9 + %s2123_s2]]  ;;  %s2124_s22 = sadd.s32 4, %s1787_s3 }
  0x59   : > { %828 = vmatpush.msra.mxu0 %v821_v56  ;;  %720 = vmatpush.msrb.mxu1 %v665_v4  ;;  %v470_v30 = vld [vmem:[%s469_s16] sm:$0x1]  ;;  %s1968_s16 = sld [smem:[#allocation9 + %s2124_s22]] }
  0x5a   : > { %740 = vmatpush.msrb.mxu2 %v666_v5  ;;  %760 = vmatpush.msrb.mxu3 %v667_v6  ;;  %v478_v31 = vld [vmem:[%s477_s20] sm:$0x1]  ;;  %471 = vst [vmem:[#allocation5] sm:$0x1] %v470_v30  ;;  %s1972_s20 = sld [smem:[#allocation9 + %s2125_s0]] }
  0x5b   : > { %829 = vmatpush.msra.mxu0 %v820_v57  ;;  %721 = vmatpush.msrb.mxu1 %v662_v8  ;;  %v486_v32 = vld [vmem:[%s485_s26] sm:$0x1]  ;;  %479 = vst [vmem:[#allocation5 + $0x1] sm:$0x1] %v478_v31  ;;  %v545_v8 = vperm.slane %v1929_v20, 2  ;;  %s2126_s26 = sadd.s32 6, %s1787_s3 }
  0x5c   : > { %741 = vmatpush.msrb.mxu2 %v663_v9  ;;  %761 = vmatpush.msrb.mxu3 %v664_v10  ;;  %v494_v34 = vld [vmem:[%s493_s28] sm:$0x1]  ;;  %487 = vst [vmem:[#allocation5 + $0x2] sm:$0x1] %v486_v32  ;;  %s1976_s28 = sld [smem:[#allocation9 + %s2126_s26]]  ;;  %s916_s26 = scalar_lea.vmem [#allocation2], %s1952_s25 }
  0x5d   : > { %830 = vmatpush.msra.mxu0 %v819_v58  ;;  %722 = vmatpush.msrb.mxu1 %v659_v12  ;;  %v502_v36 = vld [vmem:[%s501_s17] sm:$0x1]  ;;  %495 = vst [vmem:[#allocation5 + $0x3] sm:$0x1] %v494_v34  ;;  %s919_s17 = scalar_lea.vmem [#allocation3], %s1952_s25  ;;  %s1985_s2 = sld [smem:[#allocation9 + %s520_s15]] }
  0x5e   : > { %742 = vmatpush.msrb.mxu2 %v660_v13  ;;  %762 = vmatpush.msrb.mxu3 %v661_v14  ;;  %v510_v37 = vld [vmem:[%s509_s23] sm:$0x1]  ;;  %503 = vst [vmem:[#allocation5 + $0x4] sm:$0x1] %v502_v36  ;;  %s926_s23 = scalar_lea.vmem [#allocation3], %s1956_s27  ;;  %s930_s3 = scalar_lea.vmem [#allocation2], %s1960_s18 }
  0x5f   : > { %831 = vmatpush.msra.mxu0 %v818_v59  ;;  %v518_v38 = vld [vmem:[%s517_s11] sm:$0x1]  ;;  %511 = vst [vmem:[#allocation5 + $0x5] sm:$0x1] %v510_v37  ;;  %s933_s11 = scalar_lea.vmem [#allocation3], %s1960_s18  ;;  %s947_s21 = scalar_lea.vmem [#allocation3], %s1968_s16 }
  0x60   : > { %v526_v39 = vld [vmem:[%s525_s14] sm:$0x1]  ;;  %519 = vst [vmem:[#allocation5 + $0x6] sm:$0x1] %v518_v38  ;;  %s940_s14 = scalar_lea.vmem [#allocation3], %s1964_s13  ;;  %s954_s22 = scalar_lea.vmem [#allocation3], %s1972_s20 }
  0x61   : > { %832 = vmatpush.msra.mxu0 %v817_v63  ;;  %527 = vst [vmem:[#allocation5 + $0x7] sm:$0x1] %v526_v39  ;;  %s937_s15 = scalar_lea.vmem [#allocation2], %s1964_s13  ;;  %s974_s18 = sld [smem:[#allocation11]] (!%p1316_p1) }
  0x62   : > { %s961_s0 = scalar_lea.vmem [#allocation3], %s1976_s28  ;;  %s958_s25 = scalar_lea.vmem [#allocation2], %s1976_s28 }
  0x63   : > { %833 = vmatpush.msra.mxu0 %v816_v3  ;;  %s1317_s13 = sld [smem:[#allocation11 + $0x1]] (!%p1316_p1) }
  0x65   : > { %834 = vmatpush.msra.mxu0 %v815_v7 }
  0x67   : > { %835 = vmatpush.msra.mxu0 %v814_v11  ;;  %s975_s28 = scalar_lea.vmem (!%p1316_p1), [#allocation2], %s974_s18 }
  0x68   : > { %v532_v54 = vld [vmem:[#allocation5] sm:$0xff] }
  0x69   : > { %836 = vmatpush.msra.mxu0 %v813_v15  ;;  %s985_s30 = scalar_lea.vmem (!%p1316_p1), [#allocation3], %s1317_s13 }
  0x6b   : > { %837 = vmatpush.msra.mxu0 %v812_v16 }
  0x6d   : > { %838 = vmatpush.msra.mxu0 %v811_v17 }
  0x6f   : > { %839 = vmatpush.msra.mxu0 %v810_v18 }
  0x71   : > { %840 = vmatpush.msra.mxu0 %v809_v19 }
  0x72   : > { %841 = vmatmul.f32.vlgmr.msra.gmra.mxu0 %v1886_v49 }
  0xb9   : > { %v572_v24 = vpop.f32.mrf.mxu0 }
  0xba   : > { %v573_v29 = vadd.f32 %v572_v24, %v543_v28 }
  0xbb   : > { %v592_v27 = vpop.f32.mrf.mxu1 }
  0xbc   : > { %v593_v63 = vadd.f32 %v592_v27, %v544_v61 }
  0xbf   : > { %v632_v22 = vpop.f32.mrf.mxu3 }
  0xc0   : > { %v633_v23 = vadd.f32 %v632_v22, %v546_v21 }
  0xc2   : > { %863 = vmatpush.msra.mxu1 %v633_v23 }
  0xc4   : > { %v612_v59 = vpop.f32.mrf.mxu2 }
  0xc5   : > { %v613_v9 = vadd.f32 %v612_v59, %v545_v8 }
  0xcf   : > { %v656_v25 = vpop.f32.mrf.mxu0 }
  0xd0   : > { %723 = vmatmul.f32.vlgmr.msrb.gmra.mxu1 %v656_v25  ;;  %743 = vmatmul.f32.vlgmr.msrb.gmra.mxu2 %v656_v25 }
  0xd1   : > { %763 = vmatmul.f32.vlgmr.msrb.gmra.mxu3 %v656_v25 }
  0xd8   : > { %1313 = vmatmul.msk.f32.vlgmr.msra.gmra.mxu1 %vm635_vm1, %v530_v26 }
  0xef   : > { %v842_v40 = vpop.f32.mrf.mxu0 }
 0x14d   : > { %v724_v33 = vpop.f32.mrf.mxu1 }
 0x14e   : > { %v767_v35 = vadd.f32 %v724_v33, %v573_v29 }
 0x150   : > { %v1311_v60 = vmul.f32 -1.442695, %v767_v35 }
 0x153   : > { %v744_v62 = vpop.f32.mrf.mxu2 }
 0x154   : > { %v768_v0 = vadd.f32 %v744_v62, %v593_v63  ;;  %v764_v10 = vpop.f32.mrf.mxu3 }
 0x155   : > { %v865_v41 = vpop.f32.mrf.mxu1  ;;  %v769_v13 = vadd.f32 %v764_v10, %v613_v9 }
 0x156   : > { %v866_v42 = vadd.f32 %v865_v41, %v842_v40  ;;  %v1312_v2 = vmul.f32 -1.442695, %v768_v0 }
 0x158   : > { %v1314_v43 = vmul.f32 -1.442695, %v866_v42 }
 0x15a   : > { %1413 = vpow2.f32 %v1314_v43 }
 0x160   : > { %v1414_v44 = vpop.eup %1413 }
 0x161   : > { %v871_v45 = vadd.f32 1.0, %v1414_v44 }
 0x163   : > { %1415 = vrcp.f32 %v871_v45  ;;  %v883_v50 = vand.u32 2147483648, %v871_v45  ;;  %v881_v52 = vand.u32 2147483647, %v871_v45  ;;  %vm877_vm3 = vweird.f32 %v871_v45 }
 0x164   : > { %1417 = vpow2.f32 %v1311_v60 }
 0x165   : > { %v884_v55 = vor.u32 1.1754944e-38, %v883_v50  ;;  %vm882_vm5 = vcmp.eq.f32.partialorder %v881_v52, 8.507059e+37  ;;  %1419 = vpow2.f32 %v1312_v2 }
 0x169   : > { %v1416_v46 = vpop.eup %1415 }
 0x16a   : > { %v873_v48 = vmul.f32 %v1416_v46, %v871_v45  ;;  %vm878_vm2 = vweird.f32 %v1416_v46  ;;  %v1418_v1 = vpop.eup %1417 }
 0x16b   : > { %vm879_vm4 = vmor %vm877_vm3, %vm878_vm2  ;;  %v773_v3 = vadd.f32 1.0, %v1418_v1  ;;  %v1420_v4 = vpop.eup %1419 }
 0x16c   : > { %v874_v49 = vsub.f32 1.0, %v873_v48  ;;  %v792_v6 = vadd.f32 1.0, %v1420_v4 }
 0x16d   : > { %1421 = vrcp.f32 %v773_v3  ;;  %v785_v16 = vand.u32 2147483648, %v773_v3  ;;  %vm779_vm7 = vweird.f32 %v773_v3  ;;  %v783_v17 = vand.u32 2147483647, %v773_v3 }
 0x16e   : > { %v875_v51 = vmul.f32 %v1416_v46, %v874_v49  ;;  %1423 = vrcp.f32 %v792_v6  ;;  %v804_v28 = vand.u32 2147483648, %v792_v6  ;;  %vm798_vm11 = vweird.f32 %v792_v6 }
 0x16f   : > { %1425 = vtanh.f32 %v769_v13  ;;  %v786_v20 = vor.u32 1.1754944e-38, %v785_v16  ;;  %vm784_vm9 = vcmp.eq.f32.partialorder %v783_v17, 8.507059e+37  ;;  %v802_v29 = vand.u32 2147483647, %v792_v6 }
 0x170   : > { %v876_v53 = vadd.f32 %v1416_v46, %v875_v51  ;;  %v805_v31 = vor.u32 1.1754944e-38, %v804_v28 }
 0x171   : > { %vm803_vm13 = vcmp.eq.f32.partialorder %v802_v29, 8.507059e+37 }
 0x172   : > { %v880_v56 = vsel %vm879_vm4, %v1416_v46, %v876_v53 }
 0x173   : > { %v885_v57 = vsel %vm882_vm5, %v884_v55, %v880_v56  ;;  %v1422_v5 = vpop.eup %1421 }
 0x174   : > { %v887_v58 = vmul.f32 %v885_v57, %v532_v54  ;;  %v775_v7 = vmul.f32 %v1422_v5, %v773_v3  ;;  %v1424_v12 = vpop.eup %1423  ;;  %vm780_vm6 = vweird.f32 %v1422_v5 }
 0x175   : > { %v794_v15 = vmul.f32 %v1424_v12, %v792_v6  ;;  %vm781_vm8 = vmor %vm779_vm7, %vm780_vm6  ;;  %v1426_v22 = vpop.eup %1425  ;;  %vm799_vm10 = vweird.f32 %v1424_v12 }
 0x176   : > { %903 = vmatpush.msra.mxu2 %v887_v58  ;;  %vm800_vm12 = vmor %vm798_vm11, %vm799_vm10 }
 0x177   : > { %1315 = vmatmul.msk.f32.vlgmr.msra.gmra.mxu2 %vm635_vm1, %v1883_v47  ;;  %v776_v47 = vsub.f32 1.0, %v775_v7  ;;  %v795_v19 = vsub.f32 1.0, %v794_v15 }
 0x179   : > { %v777_v11 = vmul.f32 %v1422_v5, %v776_v47  ;;  %v796_v23 = vmul.f32 %v1424_v12, %v795_v19 }
 0x17b   : > { %v778_v14 = vadd.f32 %v1422_v5, %v777_v11  ;;  %v797_v27 = vadd.f32 %v1424_v12, %v796_v23 }
 0x17d   : > { %v782_v18 = vsel %vm781_vm8, %v1422_v5, %v778_v14  ;;  %v801_v30 = vsel %vm800_vm12, %v1424_v12, %v797_v27 }
 0x17e   : > { %v787_v21 = vsel %vm784_vm9, %v786_v20, %v782_v18  ;;  %v806_v33 = vsel %vm803_vm13, %v805_v31, %v801_v30 }
 0x17f   : > { %v908_v24 = vmul.f32 %v1426_v22, %v787_v21 }
 0x1fa   : > { %v905_v25 = vpop.f32.mrf.mxu2 }
 0x1fb   : > { %v909_v26 = vadd.f32 %v908_v24, %v905_v25 }
 0x1fd   : > { %1427 = vtanh.f32 %v909_v26  ;;  %913 = vst [vmem:[#allocation7] sm:$0xff] %v909_v26 }
 0x203   : > { %v1428_v32 = vpop.eup %1427 }
 0x204   : > { %v911_v34 = vmul.f32 %v1428_v32, %v806_v33  ;;  %v918_v35 = vld [vmem:[#allocation7] sm:$0x1]  ;;  %v925_v36 = vld [vmem:[#allocation7 + $0x1] sm:$0x1]  ;;  %v932_v37 = vld [vmem:[#allocation7 + $0x2] sm:$0x1] }
 0x205   : > { %920 = vst [vmem:[%s919_s17] sm:$0x1] %v918_v35  ;;  %v939_v38 = vld [vmem:[#allocation7 + $0x3] sm:$0x1]  ;;  %v946_v39 = vld [vmem:[#allocation7 + $0x4] sm:$0x1]  ;;  %s923_s17 = scalar_lea.vmem [#allocation2], %s1956_s27 }
 0x206   : > { %912 = vst [vmem:[#allocation6] sm:$0xff] %v911_v34  ;;  %v953_v40 = vld [vmem:[#allocation7 + $0x5] sm:$0x1]  ;;  %v960_v41 = vld [vmem:[#allocation7 + $0x6] sm:$0x1]  ;;  %s965_s27 = scalar_lea.vmem [#allocation2], %s1985_s2 }
 0x207   : > { %927 = vst [vmem:[%s926_s23] sm:$0x1] %v925_v36  ;;  %s944_s23 = scalar_lea.vmem [#allocation2], %s1968_s16  ;;  %v967_v51 = vld [vmem:[#allocation7 + $0x7] sm:$0x1]  ;;  %s1318_s16 = sld [smem:[#allocation11 + $0x2]] (!%p1316_p1) }
 0x208   : > { %934 = vst [vmem:[%s933_s11] sm:$0x1] %v932_v37  ;;  %s951_s11 = scalar_lea.vmem [#allocation2], %s1972_s20  ;;  %s1319_s20 = sld [smem:[#allocation11 + $0x3]] (!%p1316_p1) }
 0x209   : > { %941 = vst [vmem:[%s940_s14] sm:$0x1] %v939_v38  ;;  %s968_s14 = scalar_lea.vmem [#allocation3], %s1985_s2  ;;  %s982_s2 = scalar_lea.vmem (!%p1316_p1), [#allocation2], %s1317_s13 }
 0x20a   : > { %948 = vst [vmem:[%s947_s21] sm:$0x1] %v946_v39  ;;  %s1320_s21 = sld [smem:[#allocation11 + $0x4]] (!%p1316_p1) }
 0x20b   : > { %955 = vst [vmem:[%s954_s22] sm:$0x1] %v953_v40  ;;  %s1999_s22 = sld [smem:[#allocation11 + $0x5]] (!%p1316_p1) }
 0x20c   : > { %962 = vst [vmem:[%s961_s0] sm:$0x1] %v960_v41  ;;  %s978_s0 = scalar_lea.vmem (!%p1316_p1), [#allocation3], %s974_s18  ;;  %s1323_s18 = sld [smem:[#allocation11 + $0x7]] (!%p1316_p1) }
 0x20d   : > { %v915_v42 = vld [vmem:[#allocation6] sm:$0x1]  ;;  %v922_v43 = vld [vmem:[#allocation6 + $0x1] sm:$0x1]  ;;  %v929_v44 = vld [vmem:[#allocation6 + $0x2] sm:$0x1] }
 0x20e   : > { %917 = vst [vmem:[%s916_s26] sm:$0x1] %v915_v42  ;;  %v936_v45 = vld [vmem:[#allocation6 + $0x3] sm:$0x1]  ;;  %v943_v46 = vld [vmem:[#allocation6 + $0x4] sm:$0x1]  ;;  %s989_s26 = scalar_lea.vmem (!%p1316_p1), [#allocation2], %s1318_s16 }
 0x20f   : > { %924 = vst [vmem:[%s923_s17] sm:$0x1] %v922_v43  ;;  %v950_v48 = vld [vmem:[#allocation6 + $0x5] sm:$0x1]  ;;  %v957_v49 = vld [vmem:[#allocation6 + $0x6] sm:$0x1]  ;;  %s992_s17 = scalar_lea.vmem (!%p1316_p1), [#allocation3], %s1318_s16 }
 0x210   : > { %931 = vst [vmem:[%s930_s3] sm:$0x1] %v929_v44  ;;  %v964_v50 = vld [vmem:[#allocation6 + $0x7] sm:$0x1]  ;;  %s996_s3 = scalar_lea.vmem (!%p1316_p1), [#allocation2], %s1319_s20 }
 0x211   : > { %938 = vst [vmem:[%s937_s15] sm:$0x1] %v936_v45  ;;  %s999_s15 = scalar_lea.vmem (!%p1316_p1), [#allocation3], %s1319_s20 }
 0x212   : > { %945 = vst [vmem:[%s944_s23] sm:$0x1] %v943_v46  ;;  %973 = sbr.rel (%p1316_p1) target bundleno = 557 (0x22d), region = 56  ;;  %s1003_s23 = scalar_lea.vmem (!%p1316_p1), [#allocation2], %s1320_s21 }
 0x213   : > { %952 = vst [vmem:[%s951_s11] sm:$0x1] %v950_v48  ;;  %s1006_s11 = scalar_lea.vmem (!%p1316_p1), [#allocation3], %s1320_s21  ;;  %s1024_s20 = scalar_lea.vmem (!%p1316_p1), [#allocation2], %s1323_s18 }
 0x214   : > { %959 = vst [vmem:[%s958_s25] sm:$0x1] %v957_v49  ;;  %s1010_s25 = scalar_lea.vmem (!%p1316_p1), [#allocation2], %s1999_s22  ;;  %s1027_s21 = scalar_lea.vmem (!%p1316_p1), [#allocation3], %s1323_s18 }
 0x215   : > { %966 = vst [vmem:[%s965_s27] sm:$0x1] %v964_v50  ;;  %s1322_s27 = sld [smem:[#allocation11 + $0x6]] (!%p1316_p1) }
 0x216   : > { %969 = vst [vmem:[%s968_s14] sm:$0x1] %v967_v51  ;;  %s1013_s14 = scalar_lea.vmem (!%p1316_p1), [#allocation3], %s1999_s22 }
 0x21b   : > { %s1017_s13 = scalar_lea.vmem [#allocation2], %s1322_s27  ;;  %s1020_s16 = scalar_lea.vmem [#allocation3], %s1322_s27 }
 0x21c   : > { %v976_v52 = vld [vmem:[%s975_s28] sm:$0x1] }
 0x21d   : > { %v979_v53 = vld [vmem:[%s978_s0] sm:$0x1]  ;;  %977 = vst [vmem:[%s1779_s1] sm:$0x1] %v976_v52 }
 0x21e   : > { %v983_v54 = vld [vmem:[%s982_s2] sm:$0x1]  ;;  %980 = vst [vmem:[%s1781_s29] sm:$0x1] %v979_v53 }
 0x21f   : > { %v986_v55 = vld [vmem:[%s985_s30] sm:$0x1]  ;;  %984 = vst [vmem:[%s1779_s1 + $0x1] sm:$0x1] %v983_v54 }
 0x220   : > { %v990_v56 = vld [vmem:[%s989_s26] sm:$0x1]  ;;  %987 = vst [vmem:[%s1781_s29 + $0x1] sm:$0x1] %v986_v55 }
 0x221   : > { %v993_v57 = vld [vmem:[%s992_s17] sm:$0x1]  ;;  %991 = vst [vmem:[%s1779_s1 + $0x2] sm:$0x1] %v990_v56 }
 0x222   : > { %v997_v58 = vld [vmem:[%s996_s3] sm:$0x1]  ;;  %994 = vst [vmem:[%s1781_s29 + $0x2] sm:$0x1] %v993_v57 }
 0x223   : > { %v1000_v59 = vld [vmem:[%s999_s15] sm:$0x1]  ;;  %998 = vst [vmem:[%s1779_s1 + $0x3] sm:$0x1] %v997_v58 }
 0x224   : > { %v1004_v60 = vld [vmem:[%s1003_s23] sm:$0x1]  ;;  %1001 = vst [vmem:[%s1781_s29 + $0x3] sm:$0x1] %v1000_v59 }
 0x225   : > { %v1007_v61 = vld [vmem:[%s1006_s11] sm:$0x1]  ;;  %1005 = vst [vmem:[%s1779_s1 + $0x4] sm:$0x1] %v1004_v60 }
 0x226   : > { %v1011_v62 = vld [vmem:[%s1010_s25] sm:$0x1]  ;;  %1008 = vst [vmem:[%s1781_s29 + $0x4] sm:$0x1] %v1007_v61 }
 0x227   : > { %v1014_v63 = vld [vmem:[%s1013_s14] sm:$0x1]  ;;  %1012 = vst [vmem:[%s1779_s1 + $0x5] sm:$0x1] %v1011_v62 }
 0x228   : > { %1015 = vst [vmem:[%s1781_s29 + $0x5] sm:$0x1] %v1014_v63  ;;  %v1018_v0 = vld [vmem:[%s1017_s13] sm:$0x1] }
 0x229   : > { %v1021_v1 = vld [vmem:[%s1020_s16] sm:$0x1]  ;;  %1019 = vst [vmem:[%s1779_s1 + $0x6] sm:$0x1] %v1018_v0 }
 0x22a   : > { %v1025_v2 = vld [vmem:[%s1024_s20] sm:$0x1]  ;;  %1022 = vst [vmem:[%s1781_s29 + $0x6] sm:$0x1] %v1021_v1 }
 0x22b   : > { %v1028_v3 = vld [vmem:[%s1027_s21] sm:$0x1]  ;;  %1026 = vst [vmem:[%s1779_s1 + $0x7] sm:$0x1] %v1025_v2 }
 0x22c   : > { %1029 = vst [vmem:[%s1781_s29 + $0x7] sm:$0x1] %v1028_v3 }
 0x22d PF: > { %s1326_s22 = sshll.u32 %s1581_s12, 3  ;;  %s1048_s30 = sshll.u32 %s1779_s1, 4  ;;  %s1049_s30 = int_to_ptr.vmem [resolvable:$true] %s1048_s30 }
 0x22e   : > { %s1046_s2 = scalar_lea.hbm %s2086_s10, %s1326_s22  ;;  %s1031_s17 = scalar_lea.sflag [#allocation13], %s1738_s24 }
 0x22f   : > { %s1050_s26 = sshll.u32 %s1046_s2, 4  ;;  %s1485_s12 = scalar_lea.hbm %s2086_s10, 16  ;;  %s1051_s26 = int_to_ptr.hbm [resolvable:$true] %s1050_s26 }
 0x230   : > { %s1479_s3 = sshra.s32 %s1051_s26, 4  ;;  %s1480_s3 = int_to_ptr.hbm [resolvable:$true] %s1479_s3 }
 0x231   : > { %s1481_s15 = scalar_lea.hbm %s1480_s3, 8  ;;  %p1486_p6 = scmp.lt.s32.totalorder %s1480_s3, %s2086_s10 }
 0x232   : > { %p1482_p2 = scmp.ne.s32.totalorder %s1480_s3, %s1481_s15  ;;  %p1487_p7 = scmp.lt.s32.totalorder %s1485_s12, %s1481_s15 }
 0x234   : > { %p1483_p4 = pnand %p1482_p2, %p1717_p3  ;;  %p1488_p8 = por %p1487_p7, %p1486_p6 }
 0x236   : > { %p1484_p5 = pneg %p1483_p4 }
 0x238   : > { %p1489_p10 = pnand %p1488_p8, %p1484_p5 }
 0x23a   : > { %1492 = shalt.err (!%p1489_p10)
}
 0x23b   : > { %1333 = dma.vmem_to_hbm [thread:$0]  (%p1717_p3), %s1049_s30, 128, %s1051_s26, %s1031_s17  }
 0x23c   : > { %s2127_s18 = sld [smem:[#allocation30_spill]]  ;;  %s1062_s16 = sshll.u32 %s1781_s29, 4  ;;  %s1063_s16 = int_to_ptr.vmem [resolvable:$true] %s1062_s16 }
 0x23d   : > { %s1036_s21 = scalar_lea.sflag [#allocation15], %s1738_s24 }
 0x242   : > { %s1060_s13 = scalar_lea.hbm %s2127_s18, %s1326_s22  ;;  %s1513_s30 = scalar_lea.hbm %s2127_s18, 16 }
 0x243   : > { %s1064_s20 = sshll.u32 %s1060_s13, 4  ;;  %s1065_s20 = int_to_ptr.hbm [resolvable:$true] %s1064_s20 }
 0x244   : > { %s1507_s28 = sshra.s32 %s1065_s20, 4  ;;  %s1508_s28 = int_to_ptr.hbm [resolvable:$true] %s1507_s28 }
 0x245   : > { %s1509_s0 = scalar_lea.hbm %s1508_s28, 8  ;;  %p1514_p0 = scmp.lt.s32.totalorder %s1508_s28, %s2127_s18 }
 0x246   : > { %p1510_p11 = scmp.ne.s32.totalorder %s1508_s28, %s1509_s0  ;;  %p1515_p1 = scmp.lt.s32.totalorder %s1513_s30, %s1509_s0 }
 0x248   : > { %p1511_p12 = pnand %p1510_p11, %p1717_p3  ;;  %p1516_p2 = por %p1515_p1, %p1514_p0 }
 0x24a   : > { %p1512_p13 = pneg %p1511_p12 }
 0x24c   : > { %p1517_p4 = pnand %p1516_p2, %p1512_p13 }
 0x24e   : > { %1520 = shalt.err (!%p1517_p4)
}
 0x24f   : > { %1334 = dma.vmem_to_hbm [thread:$0]  (%p1717_p3), %s1063_s16, 128, %s1065_s20, %s1036_s21  }
 0x250 PF: > { %s2128_s24 = sld [smem:[#allocation24_spill]] }
 0x251   : > { %s2129_s29 = sld [smem:[#allocation19_spill]] }
 0x256   : > { %p1344_p5 = scmp.ge.s32.totalorder %s2128_s24, 2 }
 0x257   : > { %s1076_s15 = sand.u32 1, %s2129_s29  }
 0x258   : > { %p1338_p6 = pnand %p1344_p5, %p1727_p9  ;;  %s1077_s23 = scalar_lea.sflag [#allocation13], %s1076_s15 }
 0x25a   : > { %p1339_p7 = pneg %p1338_p6 }
 0x25c   : > { %1556 = dma.done.wait (%p1339_p7), %s1077_s23, 128  }
 0x25d   : > { %1558 = vsyncadd (%p1339_p7), %s1077_s23, 4294967168  ;;  %s1087_s11 = scalar_lea.sflag [#allocation15], %s1076_s15 }
 0x25e   : > { %1560 = dma.done.wait (%p1339_p7), %s1087_s11, 128  }
 0x25f   : > { %1562 = vsyncadd (%p1339_p7), %s1087_s11, 4294967168  ;;  %s46_s14 = sadd.s32 1, %s2128_s24   ;;  %s2131_s0 = sld [smem:[#allocation20_spill]] }
 0x260   : > { %p43_p8 = scmp.ge.s32.totalorder %s46_s14, 8   ;;  %s2132_s1 = sld [smem:[#allocation21_spill]] }
 0x261   : > { %s2133_s29 = sld [smem:[#allocation28_spill]] }
 0x262   : > { %s2134_s30 = sld [smem:[#allocation22_spill]]  ;;  %45 = sbr.rel (!%p43_p8) target bundleno = 17 (0x11), region = 174 }
 0x263   : > { %s2135_s12 = sld [smem:[#allocation23_spill]] }
 0x264   : > { %s2136_s2 = sld [smem:[#allocation25_spill]] }
 0x265   : > { %s2137_s13 = sld [smem:[#allocation26_spill]] }
 0x267   :  { %1093 = vsyncpa [#allocation13], 1 }
 0x268   :  { %1095 = vsyncpa [#allocation13 + $0x1], 1 }
 0x269   :  { %1096 = vsyncpa [#allocation15], 1 }
 0x26a   :  { %1098 = vsyncpa [#allocation15 + $0x1], 1 }

</bundles_post_ra>
